<compile_context>
chip_gen: v6e
topology: v6e:2x2x1
jax: 0.10.0
libtpu: 0.0.40
codegen_flags: <defaults>
</compile_context>

<pallas_src>
import jax
import jax.numpy as jnp
from jax import lax
from jax.experimental import pallas as pl
from jax.experimental.pallas import tpu as pltpu

# --- Module config: SeparableConv2dRes(in_channels=4, out_channels=8,
#                                       kernel_size1=3, kernel_size2=3,
#                                       dilation_rate=1, groupsGN=2) ---
N, CIN, H, W = 2, 4, 16, 16
COUT = 8
K1, K2 = 3, 3
DIL = 1
G = 2                      # groupsGN
EPS = 1e-5                 # nn.GroupNorm default eps
HW = H * W                 # 256 -> lane-dense (2 x 128 lanes)
NCIN = N * CIN             # 8  -> full sublane occupancy
NCOUT = N * COUT           # 16
KK = K1 * K2               # 9
GS = COUT // G             # channels per group in the 2nd GroupNorm

# PyTorch padding='same' (asymmetric rule: extra padding goes to the end)
PH = DIL * (K1 - 1)
PWW = DIL * (K2 - 1)
PAD_T, PAD_B = PH // 2, PH - PH // 2
PAD_L, PAD_R = PWW // 2, PWW - PWW // 2

# Packed VMEM parameter slab layout: (NCIN, NPRM)
OFF_W2 = G * KK            # cols [0, 18): depthwise weights, col = g*KK + tap
OFF_GW = OFF_W2 + G        # cols [18, 20): 1x1 conv weight columns w2[:, g]
OFF_GB = OFF_GW + 1        # col 20: GroupNorm2 gamma; col 21: GroupNorm2 beta
NPRM = OFF_GB + 1          # 22

assert W & (W - 1) == 0, "cheap column mask needs W to be a power of two"
assert max(PAD_T, PAD_B) < H and max(PAD_L, PAD_R) < W, "halo masks assume |shift| < H, W"
# TODO(synk): the roll+mask halo trick assumes |dy| < H and |dx| < W; guard before
# reusing with much larger kernel_size / dilation configs.


def _sep_conv_kernel(x_ref, prm_ref, gn1_ref, o_ref):
    x = x_ref[...]                                       # (NCIN, HW) f32, dense slab
    prm = prm_ref[...]                                   # (NCIN, NPRM) packed params

    hw_idx = lax.broadcasted_iota(jnp.int32, (NCIN, HW), 1)
    col = jnp.bitwise_and(hw_idx, W - 1)                 # hw_idx % W  (W power of 2)

    # Boundary masks ("source pixel inside image"), built once, shared across taps.
    row_masks, col_masks = {}, {}

    def row_mask(dy):
        if dy not in row_masks:
            row_masks[dy] = (hw_idx >= (-dy) * W) if dy < 0 else (hw_idx < (H - dy) * W)
        return row_masks[dy]

    def col_mask(dx):
        if dx not in col_masks:
            col_masks[dx] = (col >= -dx) if dx < 0 else (col < W - dx)
        return col_masks[dx]

    # ---- depthwise Conv2d(CIN->G, 3x3, 'same'): fused roll+mask+FMA per tap ----
    acc = [None] * G                                     # per-group (NCIN, HW) accumulators
    for i in range(K1):
        dy = i * DIL - PAD_T
        for j in range(K2):
            dx = j * DIL - PAD_L
            t = i * K2 + j
            s = dy * W + dx                              # shift in flattened HW space
            sh = x if s == 0 else pltpu.roll(x, (-s) % HW, 1)     # sh[idx] = x[idx + s]
            valid = None
            if dy != 0:
                valid = row_mask(dy)
            if dx != 0:
                m = col_mask(dx)
                valid = m if valid is None else (valid & m)
            if valid is not None:
                sh = jnp.where(valid, sh, 0.0)           # zero 'same' halo
            for g in range(G):
                wcol = prm[:, g * KK + t:g * KK + t + 1]          # (NCIN, 1) per-sublane weight
                contrib = sh * wcol                                # full-slab FMA
                acc[g] = contrib if acc[g] is None else acc[g] + contrib

    # ---- channel reduce + GroupNorm(G, G) + ReLU (one channel per group) ----
    h1 = [[None] * G for _ in range(N)]
    for g in range(G):
        for n in range(N):
            d = jnp.sum(acc[g][n * CIN:(n + 1) * CIN, :], axis=0, keepdims=True)   # (1, HW)
            mu = jnp.mean(d)
            var = jnp.mean((d - mu) ** 2)                # two-pass (stable)
            xn = (d - mu) * lax.rsqrt(var + EPS)
            h1[n][g] = jnp.maximum(xn * gn1_ref[g] + gn1_ref[G + g], 0.0)

    # ---- pointwiseRes: Conv2d(G->COUT, 1x1) + GroupNorm(G, COUT), per sample ----
    row_idx = lax.broadcasted_iota(jnp.int32, (COUT, 1), 0)
    grp_masks = [(row_idx >= grp * GS) & (row_idx < (grp + 1) * GS) for grp in range(G)]
    g2w_col = prm[:, OFF_GW:OFF_GW + 1]                  # (COUT, 1)
    g2b_col = prm[:, OFF_GB:OFF_GB + 1]                  # (COUT, 1)

    for n in range(N):
        h2 = h1[n][0] * prm[:, OFF_W2:OFF_W2 + 1]        # (1,HW) x (COUT,1) -> (COUT,HW)
        for g in range(1, G):
            h2 = h2 + h1[n][g] * prm[:, OFF_W2 + g:OFF_W2 + g + 1]

        # per-group stats, assembled into (COUT,1) columns so h2 stays one dense slab
        mu_col = jnp.zeros((COUT, 1), jnp.float32)
        for grp in range(G):
            mu_g = jnp.mean(h2[grp * GS:(grp + 1) * GS, :])
            mu_col = jnp.where(grp_masks[grp], mu_g, mu_col)
        diff = h2 - mu_col
        inv_col = jnp.zeros((COUT, 1), jnp.float32)
        for grp in range(G):
            var_g = jnp.mean(diff[grp * GS:(grp + 1) * GS, :] ** 2)   # two-pass (stable)
            inv_col = jnp.where(grp_masks[grp], lax.rsqrt(var_g + EPS), inv_col)

        out_n = diff * (inv_col * g2w_col) + g2b_col     # (COUT, HW) dense slab
        # full-sublane, full-lane unmasked store (row offset n*COUT is 8-aligned)
        o_ref[n * COUT:(n + 1) * COUT, :] = out_n.astype(o_ref.dtype)


@jax.jit
def separable_conv2d_res(x, w1, g1w, g1b, w2, g2w, g2b):
    # Wrapper-side reshapes / packing are cheap host-graph ops; no jnp.pad, no halo DMA.
    xf = x.reshape(NCIN, HW)                                             # (8, 256)
    # depthwise weights -> (NCIN, G*KK): row n*CIN+c, col g*KK+t  holds w1[g, c, t]
    w1cols = jnp.tile(
        w1.reshape(G, CIN, KK).transpose(1, 0, 2).reshape(CIN, G * KK), (N, 1))
    # single packed VMEM parameter slab (one DMA): [w1cols | w2 | g2w | g2b]
    prm = jnp.concatenate([w1cols, w2, g2w[:, None], g2b[:, None]], axis=1)   # (8, 22)
    gn1 = jnp.concatenate([g1w, g1b])                                    # (2G,) -> SMEM

    out = pl.pallas_call(
        _sep_conv_kernel,
        out_shape=jax.ShapeDtypeStruct((NCOUT, HW), jnp.float32),
        grid=(1,),
        in_specs=[
            pl.BlockSpec((NCIN, HW), lambda i: (0, 0)),      # fused batch slab (8, 256)
            pl.BlockSpec((NCIN, NPRM), lambda i: (0, 0)),    # packed params (8, 22) in VMEM
            pl.BlockSpec(memory_space=pltpu.MemorySpace.SMEM),   # gn1 gamma/beta (2G,)
        ],
        out_specs=pl.BlockSpec((NCOUT, HW), lambda i: (0, 0)),
        compiler_params=pltpu.CompilerParams(dimension_semantics=("arbitrary",)),
    )(xf, prm, gn1)
    return out.reshape(N, COUT, H, W)


def ref_forward(x, w1, g1w, g1b, w2, g2w, g2b):
    """Pure-JAX reference mirroring the PyTorch module."""
    y = lax.conv_general_dilated(
        x, w1, window_strides=(1, 1),
        padding=[(PAD_T, PAD_B), (PAD_L, PAD_R)],
        rhs_dilation=(DIL, DIL),
        dimension_numbers=("NCHW", "OIHW", "NCHW"))
    # GroupNorm(G, G): one channel per group
    mu = y.mean(axis=(2, 3), keepdims=True)
    var = ((y - mu) ** 2).mean(axis=(2, 3), keepdims=True)
    y = (y - mu) / jnp.sqrt(var + EPS) * g1w[None, :, None, None] + g1b[None, :, None, None]
    y = jnp.maximum(y, 0.0)
    z = jnp.einsum("oc,nchw->nohw", w2, y)
    zr = z.reshape(N, G, COUT // G, H, W)
    mu = zr.mean(axis=(2, 3, 4), keepdims=True)
    var = ((zr - mu) ** 2).mean(axis=(2, 3, 4), keepdims=True)
    zn = ((zr - mu) / jnp.sqrt(var + EPS)).reshape(N, COUT, H, W)
    return zn * g2w[None, :, None, None] + g2b[None, :, None, None]


if __name__ == "__main__":
    key = jax.random.PRNGKey(0)
    ks = jax.random.split(key, 7)
    x = jax.random.normal(ks[0], (N, CIN, H, W), jnp.float32)
    # deterministic synthetic parameters (shapes from the module's __init__)
    w1 = jax.random.normal(ks[1], (G, CIN, K1, K2), jnp.float32) * 0.2   # depthwise conv weight
    g1w = 1.0 + 0.1 * jax.random.normal(ks[2], (G,), jnp.float32)        # GroupNorm(G, G) gamma
    g1b = 0.1 * jax.random.normal(ks[3], (G,), jnp.float32)              # GroupNorm(G, G) beta
    w2 = jax.random.normal(ks[4], (COUT, G), jnp.float32) * 0.3          # 1x1 conv weight (COUT, G, 1, 1) squeezed
    g2w = 1.0 + 0.1 * jax.random.normal(ks[5], (COUT,), jnp.float32)     # GroupNorm(G, COUT) gamma
    g2b = 0.1 * jax.random.normal(ks[6], (COUT,), jnp.float32)           # GroupNorm(G, COUT) beta

    out = separable_conv2d_res(x, w1, g1w, g1b, w2, g2w, g2b)
    jax.block_until_ready(out)

    ref = ref_forward(x, w1, g1w, g1b, w2, g2w, g2b)
    assert out.shape == (N, COUT, H, W)
    max_err = float(jnp.max(jnp.abs(out - ref)))
    assert jnp.allclose(out, ref, atol=2e-4, rtol=2e-4), f"max abs err = {max_err}"
    print("KERNEL_OK")
</pallas_src>

<mosaic_0001>
module attributes {stable_mosaic.version = 11 : i64} {
  func.func @_sep_conv_kernel(%arg0: i32, %arg1: memref<8x256xf32, #tpu.memory_space<vmem>>, %arg2: memref<8x22xf32, #tpu.memory_space<vmem>>, %arg3: memref<4xf32, #tpu.memory_space<smem>>, %arg4: memref<16x256xf32, #tpu.memory_space<vmem>>) attributes {dimension_semantics = [#tpu.dimension_semantics<arbitrary>], iteration_bounds = array<i64: 1>, scalar_prefetch = 0 : i64, scratch_operands = 0 : i64, tpu.core_type = #tpu.core_type<tc>, window_params = [{pipeline_mode = #tpu.pipeline_mode<synchronous>, transform_indices = @transform_0, window_bounds = array<i64: 8, 256>}, {pipeline_mode = #tpu.pipeline_mode<synchronous>, transform_indices = @transform_1, window_bounds = array<i64: 8, 22>}, {transform_indices = @transform_2, window_bounds = array<i64: 4>}, {pipeline_mode = #tpu.pipeline_mode<synchronous>, transform_indices = @transform_3, window_bounds = array<i64: 16, 256>}]} {
    %c0 = arith.constant 0 : index
    %c0_0 = arith.constant 0 : index
    %0 = vector.load %arg1[%c0, %c0_0] : memref<8x256xf32, #tpu.memory_space<vmem>>, vector<8x256xf32>
    %c0_1 = arith.constant 0 : index
    %c0_2 = arith.constant 0 : index
    %1 = vector.load %arg2[%c0_1, %c0_2] : memref<8x22xf32, #tpu.memory_space<vmem>>, vector<8x22xf32>
    %2 = tpu.iota {dimensions = array<i32: 1>} : vector<8x256xi32>
    %c15_i32 = arith.constant 15 : i32
    %3 = vector.broadcast %c15_i32 : i32 to vector<8x256xi32>
    %4 = arith.andi %2, %3 : vector<8x256xi32>
    %c17_i32 = arith.constant 17 : i32
    %5 = tpu.dynamic_rotate %0 by %c17_i32 dim 1 : vector<8x256xf32>, i32 -> vector<8x256xf32>
    %c16_i32 = arith.constant 16 : i32
    %6 = vector.broadcast %c16_i32 : i32 to vector<8x256xi32>
    %7 = arith.cmpi sge, %2, %6 : vector<8x256xi32>
    %c1_i32 = arith.constant 1 : i32
    %8 = vector.broadcast %c1_i32 : i32 to vector<8x256xi32>
    %9 = arith.cmpi sge, %4, %8 : vector<8x256xi32>
    %10 = arith.andi %7, %9 : vector<8x256xi1>
    %cst = arith.constant 0.000000e+00 : f32
    %11 = vector.broadcast %cst : f32 to vector<8x256xf32>
    %12 = arith.select %10, %5, %11 : vector<8x256xi1>, vector<8x256xf32>
    %13 = vector.extract_strided_slice %1 {offsets = [0, 0], sizes = [8, 1], strides = [1, 1]} : vector<8x22xf32> to vector<8x1xf32>
    %14 = vector.broadcast %13 : vector<8x1xf32> to vector<8x256xf32>
    %15 = arith.mulf %12, %14 : vector<8x256xf32>
    %16 = vector.extract_strided_slice %1 {offsets = [0, 9], sizes = [8, 1], strides = [1, 1]} : vector<8x22xf32> to vector<8x1xf32>
    %17 = vector.broadcast %16 : vector<8x1xf32> to vector<8x256xf32>
    %18 = arith.mulf %12, %17 : vector<8x256xf32>
    %c16_i32_3 = arith.constant 16 : i32
    %19 = tpu.dynamic_rotate %0 by %c16_i32_3 dim 1 : vector<8x256xf32>, i32 -> vector<8x256xf32>
    %cst_4 = arith.constant 0.000000e+00 : f32
    %20 = vector.broadcast %cst_4 : f32 to vector<8x256xf32>
    %21 = arith.select %7, %19, %20 : vector<8x256xi1>, vector<8x256xf32>
    %22 = vector.extract_strided_slice %1 {offsets = [0, 1], sizes = [8, 1], strides = [1, 1]} : vector<8x22xf32> to vector<8x1xf32>
    %23 = vector.broadcast %22 : vector<8x1xf32> to vector<8x256xf32>
    %24 = arith.mulf %21, %23 : vector<8x256xf32>
    %25 = arith.addf %15, %24 : vector<8x256xf32>
    %26 = vector.extract_strided_slice %1 {offsets = [0, 10], sizes = [8, 1], strides = [1, 1]} : vector<8x22xf32> to vector<8x1xf32>
    %27 = vector.broadcast %26 : vector<8x1xf32> to vector<8x256xf32>
    %28 = arith.mulf %21, %27 : vector<8x256xf32>
    %29 = arith.addf %18, %28 : vector<8x256xf32>
    %c15_i32_5 = arith.constant 15 : i32
    %30 = tpu.dynamic_rotate %0 by %c15_i32_5 dim 1 : vector<8x256xf32>, i32 -> vector<8x256xf32>
    %c15_i32_6 = arith.constant 15 : i32
    %31 = vector.broadcast %c15_i32_6 : i32 to vector<8x256xi32>
    %32 = arith.cmpi slt, %4, %31 : vector<8x256xi32>
    %33 = arith.andi %7, %32 : vector<8x256xi1>
    %cst_7 = arith.constant 0.000000e+00 : f32
    %34 = vector.broadcast %cst_7 : f32 to vector<8x256xf32>
    %35 = arith.select %33, %30, %34 : vector<8x256xi1>, vector<8x256xf32>
    %36 = vector.extract_strided_slice %1 {offsets = [0, 2], sizes = [8, 1], strides = [1, 1]} : vector<8x22xf32> to vector<8x1xf32>
    %37 = vector.broadcast %36 : vector<8x1xf32> to vector<8x256xf32>
    %38 = arith.mulf %35, %37 : vector<8x256xf32>
    %39 = arith.addf %25, %38 : vector<8x256xf32>
    %40 = vector.extract_strided_slice %1 {offsets = [0, 11], sizes = [8, 1], strides = [1, 1]} : vector<8x22xf32> to vector<8x1xf32>
    %41 = vector.broadcast %40 : vector<8x1xf32> to vector<8x256xf32>
    %42 = arith.mulf %35, %41 : vector<8x256xf32>
    %43 = arith.addf %29, %42 : vector<8x256xf32>
    %c1_i32_8 = arith.constant 1 : i32
    %44 = tpu.dynamic_rotate %0 by %c1_i32_8 dim 1 : vector<8x256xf32>, i32 -> vector<8x256xf32>
    %cst_9 = arith.constant 0.000000e+00 : f32
    %45 = vector.broadcast %cst_9 : f32 to vector<8x256xf32>
    %46 = arith.select %9, %44, %45 : vector<8x256xi1>, vector<8x256xf32>
    %47 = vector.extract_strided_slice %1 {offsets = [0, 3], sizes = [8, 1], strides = [1, 1]} : vector<8x22xf32> to vector<8x1xf32>
    %48 = vector.broadcast %47 : vector<8x1xf32> to vector<8x256xf32>
    %49 = arith.mulf %46, %48 : vector<8x256xf32>
    %50 = arith.addf %39, %49 : vector<8x256xf32>
    %51 = vector.extract_strided_slice %1 {offsets = [0, 12], sizes = [8, 1], strides = [1, 1]} : vector<8x22xf32> to vector<8x1xf32>
    %52 = vector.broadcast %51 : vector<8x1xf32> to vector<8x256xf32>
    %53 = arith.mulf %46, %52 : vector<8x256xf32>
    %54 = arith.addf %43, %53 : vector<8x256xf32>
    %55 = vector.extract_strided_slice %1 {offsets = [0, 4], sizes = [8, 1], strides = [1, 1]} : vector<8x22xf32> to vector<8x1xf32>
    %56 = vector.broadcast %55 : vector<8x1xf32> to vector<8x256xf32>
    %57 = arith.mulf %0, %56 : vector<8x256xf32>
    %58 = arith.addf %50, %57 : vector<8x256xf32>
    %59 = vector.extract_strided_slice %1 {offsets = [0, 13], sizes = [8, 1], strides = [1, 1]} : vector<8x22xf32> to vector<8x1xf32>
    %60 = vector.broadcast %59 : vector<8x1xf32> to vector<8x256xf32>
    %61 = arith.mulf %0, %60 : vector<8x256xf32>
    %62 = arith.addf %54, %61 : vector<8x256xf32>
    %c255_i32 = arith.constant 255 : i32
    %63 = tpu.dynamic_rotate %0 by %c255_i32 dim 1 : vector<8x256xf32>, i32 -> vector<8x256xf32>
    %cst_10 = arith.constant 0.000000e+00 : f32
    %64 = vector.broadcast %cst_10 : f32 to vector<8x256xf32>
    %65 = arith.select %32, %63, %64 : vector<8x256xi1>, vector<8x256xf32>
    %66 = vector.extract_strided_slice %1 {offsets = [0, 5], sizes = [8, 1], strides = [1, 1]} : vector<8x22xf32> to vector<8x1xf32>
    %67 = vector.broadcast %66 : vector<8x1xf32> to vector<8x256xf32>
    %68 = arith.mulf %65, %67 : vector<8x256xf32>
    %69 = arith.addf %58, %68 : vector<8x256xf32>
    %70 = vector.extract_strided_slice %1 {offsets = [0, 14], sizes = [8, 1], strides = [1, 1]} : vector<8x22xf32> to vector<8x1xf32>
    %71 = vector.broadcast %70 : vector<8x1xf32> to vector<8x256xf32>
    %72 = arith.mulf %65, %71 : vector<8x256xf32>
    %73 = arith.addf %62, %72 : vector<8x256xf32>
    %c241_i32 = arith.constant 241 : i32
    %74 = tpu.dynamic_rotate %0 by %c241_i32 dim 1 : vector<8x256xf32>, i32 -> vector<8x256xf32>
    %c240_i32 = arith.constant 240 : i32
    %75 = vector.broadcast %c240_i32 : i32 to vector<8x256xi32>
    %76 = arith.cmpi slt, %2, %75 : vector<8x256xi32>
    %77 = arith.andi %76, %9 : vector<8x256xi1>
    %cst_11 = arith.constant 0.000000e+00 : f32
    %78 = vector.broadcast %cst_11 : f32 to vector<8x256xf32>
    %79 = arith.select %77, %74, %78 : vector<8x256xi1>, vector<8x256xf32>
    %80 = vector.extract_strided_slice %1 {offsets = [0, 6], sizes = [8, 1], strides = [1, 1]} : vector<8x22xf32> to vector<8x1xf32>
    %81 = vector.broadcast %80 : vector<8x1xf32> to vector<8x256xf32>
    %82 = arith.mulf %79, %81 : vector<8x256xf32>
    %83 = arith.addf %69, %82 : vector<8x256xf32>
    %84 = vector.extract_strided_slice %1 {offsets = [0, 15], sizes = [8, 1], strides = [1, 1]} : vector<8x22xf32> to vector<8x1xf32>
    %85 = vector.broadcast %84 : vector<8x1xf32> to vector<8x256xf32>
    %86 = arith.mulf %79, %85 : vector<8x256xf32>
    %87 = arith.addf %73, %86 : vector<8x256xf32>
    %c240_i32_12 = arith.constant 240 : i32
    %88 = tpu.dynamic_rotate %0 by %c240_i32_12 dim 1 : vector<8x256xf32>, i32 -> vector<8x256xf32>
    %cst_13 = arith.constant 0.000000e+00 : f32
    %89 = vector.broadcast %cst_13 : f32 to vector<8x256xf32>
    %90 = arith.select %76, %88, %89 : vector<8x256xi1>, vector<8x256xf32>
    %91 = vector.extract_strided_slice %1 {offsets = [0, 7], sizes = [8, 1], strides = [1, 1]} : vector<8x22xf32> to vector<8x1xf32>
    %92 = vector.broadcast %91 : vector<8x1xf32> to vector<8x256xf32>
    %93 = arith.mulf %90, %92 : vector<8x256xf32>
    %94 = arith.addf %83, %93 : vector<8x256xf32>
    %95 = vector.extract_strided_slice %1 {offsets = [0, 16], sizes = [8, 1], strides = [1, 1]} : vector<8x22xf32> to vector<8x1xf32>
    %96 = vector.broadcast %95 : vector<8x1xf32> to vector<8x256xf32>
    %97 = arith.mulf %90, %96 : vector<8x256xf32>
    %98 = arith.addf %87, %97 : vector<8x256xf32>
    %c239_i32 = arith.constant 239 : i32
    %99 = tpu.dynamic_rotate %0 by %c239_i32 dim 1 : vector<8x256xf32>, i32 -> vector<8x256xf32>
    %100 = arith.andi %76, %32 : vector<8x256xi1>
    %cst_14 = arith.constant 0.000000e+00 : f32
    %101 = vector.broadcast %cst_14 : f32 to vector<8x256xf32>
    %102 = arith.select %100, %99, %101 : vector<8x256xi1>, vector<8x256xf32>
    %103 = vector.extract_strided_slice %1 {offsets = [0, 8], sizes = [8, 1], strides = [1, 1]} : vector<8x22xf32> to vector<8x1xf32>
    %104 = vector.broadcast %103 : vector<8x1xf32> to vector<8x256xf32>
    %105 = arith.mulf %102, %104 : vector<8x256xf32>
    %106 = arith.addf %94, %105 : vector<8x256xf32>
    %107 = vector.extract_strided_slice %1 {offsets = [0, 17], sizes = [8, 1], strides = [1, 1]} : vector<8x22xf32> to vector<8x1xf32>
    %108 = vector.broadcast %107 : vector<8x1xf32> to vector<8x256xf32>
    %109 = arith.mulf %102, %108 : vector<8x256xf32>
    %110 = arith.addf %98, %109 : vector<8x256xf32>
    %111 = vector.extract_strided_slice %106 {offsets = [0, 0], sizes = [4, 256], strides = [1, 1]} : vector<8x256xf32> to vector<4x256xf32>
    %cst_15 = arith.constant dense<0.000000e+00> : vector<256xf32>
    %112 = vector.multi_reduction <add>, %111, %cst_15 [0] : vector<4x256xf32> to vector<256xf32>
    %113 = vector.shape_cast %112 : vector<256xf32> to vector<1x256xf32>
    %114 = vector.shape_cast %113 : vector<1x256xf32> to vector<1x1x256xf32>
    %cst_16 = arith.constant dense<0.000000e+00> : vector<1xf32>
    %115 = vector.multi_reduction <add>, %114, %cst_16 [1, 2] : vector<1x1x256xf32> to vector<1xf32>
    %116 = vector.shape_cast %115 : vector<1xf32> to vector<1x1x1xf32>
    %117 = vector.extract %116[0, 0, 0] : f32 from vector<1x1x1xf32>
    %cst_17 = arith.constant 2.560000e+02 : f32
    %118 = arith.divf %117, %cst_17 : f32
    %119 = vector.broadcast %118 : f32 to vector<1x256xf32>
    %120 = arith.subf %113, %119 : vector<1x256xf32>
    %121 = arith.mulf %120, %120 : vector<1x256xf32>
    %122 = vector.shape_cast %121 : vector<1x256xf32> to vector<1x1x256xf32>
    %cst_18 = arith.constant dense<0.000000e+00> : vector<1xf32>
    %123 = vector.multi_reduction <add>, %122, %cst_18 [1, 2] : vector<1x1x256xf32> to vector<1xf32>
    %124 = vector.shape_cast %123 : vector<1xf32> to vector<1x1x1xf32>
    %125 = vector.extract %124[0, 0, 0] : f32 from vector<1x1x1xf32>
    %cst_19 = arith.constant 2.560000e+02 : f32
    %126 = arith.divf %125, %cst_19 : f32
    %127 = vector.broadcast %118 : f32 to vector<1x256xf32>
    %128 = arith.subf %113, %127 : vector<1x256xf32>
    %cst_20 = arith.constant 9.99999974E-6 : f32
    %129 = arith.addf %126, %cst_20 : f32
    %130 = math.rsqrt %129 : f32
    %131 = vector.broadcast %130 : f32 to vector<1x256xf32>
    %132 = arith.mulf %128, %131 : vector<1x256xf32>
    %c0_21 = arith.constant 0 : index
    %133 = memref.load %arg3[%c0_21] : memref<4xf32, #tpu.memory_space<smem>>
    %134 = vector.broadcast %133 : f32 to vector<1x256xf32>
    %135 = arith.mulf %132, %134 : vector<1x256xf32>
    %c2 = arith.constant 2 : index
    %136 = memref.load %arg3[%c2] : memref<4xf32, #tpu.memory_space<smem>>
    %137 = vector.broadcast %136 : f32 to vector<1x256xf32>
    %138 = arith.addf %135, %137 : vector<1x256xf32>
    %cst_22 = arith.constant 0.000000e+00 : f32
    %139 = vector.broadcast %cst_22 : f32 to vector<1x256xf32>
    %140 = arith.maximumf %138, %139 : vector<1x256xf32>
    %141 = vector.extract_strided_slice %106 {offsets = [4, 0], sizes = [4, 256], strides = [1, 1]} : vector<8x256xf32> to vector<4x256xf32>
    %cst_23 = arith.constant dense<0.000000e+00> : vector<256xf32>
    %142 = vector.multi_reduction <add>, %141, %cst_23 [0] : vector<4x256xf32> to vector<256xf32>
    %143 = vector.shape_cast %142 : vector<256xf32> to vector<1x256xf32>
    %144 = vector.shape_cast %143 : vector<1x256xf32> to vector<1x1x256xf32>
    %cst_24 = arith.constant dense<0.000000e+00> : vector<1xf32>
    %145 = vector.multi_reduction <add>, %144, %cst_24 [1, 2] : vector<1x1x256xf32> to vector<1xf32>
    %146 = vector.shape_cast %145 : vector<1xf32> to vector<1x1x1xf32>
    %147 = vector.extract %146[0, 0, 0] : f32 from vector<1x1x1xf32>
    %cst_25 = arith.constant 2.560000e+02 : f32
    %148 = arith.divf %147, %cst_25 : f32
    %149 = vector.broadcast %148 : f32 to vector<1x256xf32>
    %150 = arith.subf %143, %149 : vector<1x256xf32>
    %151 = arith.mulf %150, %150 : vector<1x256xf32>
    %152 = vector.shape_cast %151 : vector<1x256xf32> to vector<1x1x256xf32>
    %cst_26 = arith.constant dense<0.000000e+00> : vector<1xf32>
    %153 = vector.multi_reduction <add>, %152, %cst_26 [1, 2] : vector<1x1x256xf32> to vector<1xf32>
    %154 = vector.shape_cast %153 : vector<1xf32> to vector<1x1x1xf32>
    %155 = vector.extract %154[0, 0, 0] : f32 from vector<1x1x1xf32>
    %cst_27 = arith.constant 2.560000e+02 : f32
    %156 = arith.divf %155, %cst_27 : f32
    %157 = vector.broadcast %148 : f32 to vector<1x256xf32>
    %158 = arith.subf %143, %157 : vector<1x256xf32>
    %cst_28 = arith.constant 9.99999974E-6 : f32
    %159 = arith.addf %156, %cst_28 : f32
    %160 = math.rsqrt %159 : f32
    %161 = vector.broadcast %160 : f32 to vector<1x256xf32>
    %162 = arith.mulf %158, %161 : vector<1x256xf32>
    %c0_29 = arith.constant 0 : index
    %163 = memref.load %arg3[%c0_29] : memref<4xf32, #tpu.memory_space<smem>>
    %164 = vector.broadcast %163 : f32 to vector<1x256xf32>
    %165 = arith.mulf %162, %164 : vector<1x256xf32>
    %c2_30 = arith.constant 2 : index
    %166 = memref.load %arg3[%c2_30] : memref<4xf32, #tpu.memory_space<smem>>
    %167 = vector.broadcast %166 : f32 to vector<1x256xf32>
    %168 = arith.addf %165, %167 : vector<1x256xf32>
    %cst_31 = arith.constant 0.000000e+00 : f32
    %169 = vector.broadcast %cst_31 : f32 to vector<1x256xf32>
    %170 = arith.maximumf %168, %169 : vector<1x256xf32>
    %171 = vector.extract_strided_slice %110 {offsets = [0, 0], sizes = [4, 256], strides = [1, 1]} : vector<8x256xf32> to vector<4x256xf32>
    %cst_32 = arith.constant dense<0.000000e+00> : vector<256xf32>
    %172 = vector.multi_reduction <add>, %171, %cst_32 [0] : vector<4x256xf32> to vector<256xf32>
    %173 = vector.shape_cast %172 : vector<256xf32> to vector<1x256xf32>
    %174 = vector.shape_cast %173 : vector<1x256xf32> to vector<1x1x256xf32>
    %cst_33 = arith.constant dense<0.000000e+00> : vector<1xf32>
    %175 = vector.multi_reduction <add>, %174, %cst_33 [1, 2] : vector<1x1x256xf32> to vector<1xf32>
    %176 = vector.shape_cast %175 : vector<1xf32> to vector<1x1x1xf32>
    %177 = vector.extract %176[0, 0, 0] : f32 from vector<1x1x1xf32>
    %cst_34 = arith.constant 2.560000e+02 : f32
    %178 = arith.divf %177, %cst_34 : f32
    %179 = vector.broadcast %178 : f32 to vector<1x256xf32>
    %180 = arith.subf %173, %179 : vector<1x256xf32>
    %181 = arith.mulf %180, %180 : vector<1x256xf32>
    %182 = vector.shape_cast %181 : vector<1x256xf32> to vector<1x1x256xf32>
    %cst_35 = arith.constant dense<0.000000e+00> : vector<1xf32>
    %183 = vector.multi_reduction <add>, %182, %cst_35 [1, 2] : vector<1x1x256xf32> to vector<1xf32>
    %184 = vector.shape_cast %183 : vector<1xf32> to vector<1x1x1xf32>
    %185 = vector.extract %184[0, 0, 0] : f32 from vector<1x1x1xf32>
    %cst_36 = arith.constant 2.560000e+02 : f32
    %186 = arith.divf %185, %cst_36 : f32
    %187 = vector.broadcast %178 : f32 to vector<1x256xf32>
    %188 = arith.subf %173, %187 : vector<1x256xf32>
    %cst_37 = arith.constant 9.99999974E-6 : f32
    %189 = arith.addf %186, %cst_37 : f32
    %190 = math.rsqrt %189 : f32
    %191 = vector.broadcast %190 : f32 to vector<1x256xf32>
    %192 = arith.mulf %188, %191 : vector<1x256xf32>
    %c1 = arith.constant 1 : index
    %193 = memref.load %arg3[%c1] : memref<4xf32, #tpu.memory_space<smem>>
    %194 = vector.broadcast %193 : f32 to vector<1x256xf32>
    %195 = arith.mulf %192, %194 : vector<1x256xf32>
    %c3 = arith.constant 3 : index
    %196 = memref.load %arg3[%c3] : memref<4xf32, #tpu.memory_space<smem>>
    %197 = vector.broadcast %196 : f32 to vector<1x256xf32>
    %198 = arith.addf %195, %197 : vector<1x256xf32>
    %cst_38 = arith.constant 0.000000e+00 : f32
    %199 = vector.broadcast %cst_38 : f32 to vector<1x256xf32>
    %200 = arith.maximumf %198, %199 : vector<1x256xf32>
    %201 = vector.extract_strided_slice %110 {offsets = [4, 0], sizes = [4, 256], strides = [1, 1]} : vector<8x256xf32> to vector<4x256xf32>
    %cst_39 = arith.constant dense<0.000000e+00> : vector<256xf32>
    %202 = vector.multi_reduction <add>, %201, %cst_39 [0] : vector<4x256xf32> to vector<256xf32>
    %203 = vector.shape_cast %202 : vector<256xf32> to vector<1x256xf32>
    %204 = vector.shape_cast %203 : vector<1x256xf32> to vector<1x1x256xf32>
    %cst_40 = arith.constant dense<0.000000e+00> : vector<1xf32>
    %205 = vector.multi_reduction <add>, %204, %cst_40 [1, 2] : vector<1x1x256xf32> to vector<1xf32>
    %206 = vector.shape_cast %205 : vector<1xf32> to vector<1x1x1xf32>
    %207 = vector.extract %206[0, 0, 0] : f32 from vector<1x1x1xf32>
    %cst_41 = arith.constant 2.560000e+02 : f32
    %208 = arith.divf %207, %cst_41 : f32
    %209 = vector.broadcast %208 : f32 to vector<1x256xf32>
    %210 = arith.subf %203, %209 : vector<1x256xf32>
    %211 = arith.mulf %210, %210 : vector<1x256xf32>
    %212 = vector.shape_cast %211 : vector<1x256xf32> to vector<1x1x256xf32>
    %cst_42 = arith.constant dense<0.000000e+00> : vector<1xf32>
    %213 = vector.multi_reduction <add>, %212, %cst_42 [1, 2] : vector<1x1x256xf32> to vector<1xf32>
    %214 = vector.shape_cast %213 : vector<1xf32> to vector<1x1x1xf32>
    %215 = vector.extract %214[0, 0, 0] : f32 from vector<1x1x1xf32>
    %cst_43 = arith.constant 2.560000e+02 : f32
    %216 = arith.divf %215, %cst_43 : f32
    %217 = vector.broadcast %208 : f32 to vector<1x256xf32>
    %218 = arith.subf %203, %217 : vector<1x256xf32>
    %cst_44 = arith.constant 9.99999974E-6 : f32
    %219 = arith.addf %216, %cst_44 : f32
    %220 = math.rsqrt %219 : f32
    %221 = vector.broadcast %220 : f32 to vector<1x256xf32>
    %222 = arith.mulf %218, %221 : vector<1x256xf32>
    %c1_45 = arith.constant 1 : index
    %223 = memref.load %arg3[%c1_45] : memref<4xf32, #tpu.memory_space<smem>>
    %224 = vector.broadcast %223 : f32 to vector<1x256xf32>
    %225 = arith.mulf %222, %224 : vector<1x256xf32>
    %c3_46 = arith.constant 3 : index
    %226 = memref.load %arg3[%c3_46] : memref<4xf32, #tpu.memory_space<smem>>
    %227 = vector.broadcast %226 : f32 to vector<1x256xf32>
    %228 = arith.addf %225, %227 : vector<1x256xf32>
    %cst_47 = arith.constant 0.000000e+00 : f32
    %229 = vector.broadcast %cst_47 : f32 to vector<1x256xf32>
    %230 = arith.maximumf %228, %229 : vector<1x256xf32>
    %231 = tpu.iota {dimensions = array<i32: 0>} : vector<8x1xi32>
    %c0_i32 = arith.constant 0 : i32
    %232 = vector.broadcast %c0_i32 : i32 to vector<8x1xi32>
    %233 = arith.cmpi sge, %231, %232 : vector<8x1xi32>
    %c4_i32 = arith.constant 4 : i32
    %234 = vector.broadcast %c4_i32 : i32 to vector<8x1xi32>
    %235 = arith.cmpi slt, %231, %234 : vector<8x1xi32>
    %236 = arith.andi %233, %235 : vector<8x1xi1>
    %c4_i32_48 = arith.constant 4 : i32
    %237 = vector.broadcast %c4_i32_48 : i32 to vector<8x1xi32>
    %238 = arith.cmpi sge, %231, %237 : vector<8x1xi32>
    %c8_i32 = arith.constant 8 : i32
    %239 = vector.broadcast %c8_i32 : i32 to vector<8x1xi32>
    %240 = arith.cmpi slt, %231, %239 : vector<8x1xi32>
    %241 = arith.andi %238, %240 : vector<8x1xi1>
    %242 = vector.extract_strided_slice %1 {offsets = [0, 20], sizes = [8, 1], strides = [1, 1]} : vector<8x22xf32> to vector<8x1xf32>
    %243 = vector.extract_strided_slice %1 {offsets = [0, 21], sizes = [8, 1], strides = [1, 1]} : vector<8x22xf32> to vector<8x1xf32>
    %244 = vector.extract_strided_slice %1 {offsets = [0, 18], sizes = [8, 1], strides = [1, 1]} : vector<8x22xf32> to vector<8x1xf32>
    %245 = vector.broadcast %140 : vector<1x256xf32> to vector<8x256xf32>
    %246 = vector.broadcast %244 : vector<8x1xf32> to vector<8x256xf32>
    %247 = arith.mulf %245, %246 : vector<8x256xf32>
    %248 = vector.extract_strided_slice %1 {offsets = [0, 19], sizes = [8, 1], strides = [1, 1]} : vector<8x22xf32> to vector<8x1xf32>
    %249 = vector.broadcast %200 : vector<1x256xf32> to vector<8x256xf32>
    %250 = vector.broadcast %248 : vector<8x1xf32> to vector<8x256xf32>
    %251 = arith.mulf %249, %250 : vector<8x256xf32>
    %252 = arith.addf %247, %251 : vector<8x256xf32>
    %cst_49 = arith.constant 0.000000e+00 : f32
    %253 = vector.broadcast %cst_49 : f32 to vector<8x1xf32>
    %254 = vector.extract_strided_slice %252 {offsets = [0, 0], sizes = [4, 256], strides = [1, 1]} : vector<8x256xf32> to vector<4x256xf32>
    %255 = vector.shape_cast %254 : vector<4x256xf32> to vector<1x4x256xf32>
    %cst_50 = arith.constant dense<0.000000e+00> : vector<1xf32>
    %256 = vector.multi_reduction <add>, %255, %cst_50 [1, 2] : vector<1x4x256xf32> to vector<1xf32>
    %257 = vector.shape_cast %256 : vector<1xf32> to vector<1x1x1xf32>
    %258 = vector.extract %257[0, 0, 0] : f32 from vector<1x1x1xf32>
    %cst_51 = arith.constant 1.024000e+03 : f32
    %259 = arith.divf %258, %cst_51 : f32
    %260 = vector.broadcast %259 : f32 to vector<8x1xf32>
    %261 = arith.select %236, %260, %253 : vector<8x1xi1>, vector<8x1xf32>
    %262 = vector.extract_strided_slice %252 {offsets = [4, 0], sizes = [4, 256], strides = [1, 1]} : vector<8x256xf32> to vector<4x256xf32>
    %263 = vector.shape_cast %262 : vector<4x256xf32> to vector<1x4x256xf32>
    %cst_52 = arith.constant dense<0.000000e+00> : vector<1xf32>
    %264 = vector.multi_reduction <add>, %263, %cst_52 [1, 2] : vector<1x4x256xf32> to vector<1xf32>
    %265 = vector.shape_cast %264 : vector<1xf32> to vector<1x1x1xf32>
    %266 = vector.extract %265[0, 0, 0] : f32 from vector<1x1x1xf32>
    %cst_53 = arith.constant 1.024000e+03 : f32
    %267 = arith.divf %266, %cst_53 : f32
    %268 = vector.broadcast %267 : f32 to vector<8x1xf32>
    %269 = arith.select %241, %268, %261 : vector<8x1xi1>, vector<8x1xf32>
    %270 = vector.broadcast %269 : vector<8x1xf32> to vector<8x256xf32>
    %271 = arith.subf %252, %270 : vector<8x256xf32>
    %cst_54 = arith.constant 0.000000e+00 : f32
    %272 = vector.broadcast %cst_54 : f32 to vector<8x1xf32>
    %273 = vector.extract_strided_slice %271 {offsets = [0, 0], sizes = [4, 256], strides = [1, 1]} : vector<8x256xf32> to vector<4x256xf32>
    %274 = arith.mulf %273, %273 : vector<4x256xf32>
    %275 = vector.shape_cast %274 : vector<4x256xf32> to vector<1x4x256xf32>
    %cst_55 = arith.constant dense<0.000000e+00> : vector<1xf32>
    %276 = vector.multi_reduction <add>, %275, %cst_55 [1, 2] : vector<1x4x256xf32> to vector<1xf32>
    %277 = vector.shape_cast %276 : vector<1xf32> to vector<1x1x1xf32>
    %278 = vector.extract %277[0, 0, 0] : f32 from vector<1x1x1xf32>
    %cst_56 = arith.constant 1.024000e+03 : f32
    %279 = arith.divf %278, %cst_56 : f32
    %cst_57 = arith.constant 9.99999974E-6 : f32
    %280 = arith.addf %279, %cst_57 : f32
    %281 = math.rsqrt %280 : f32
    %282 = vector.broadcast %281 : f32 to vector<8x1xf32>
    %283 = arith.select %236, %282, %272 : vector<8x1xi1>, vector<8x1xf32>
    %284 = vector.extract_strided_slice %271 {offsets = [4, 0], sizes = [4, 256], strides = [1, 1]} : vector<8x256xf32> to vector<4x256xf32>
    %285 = arith.mulf %284, %284 : vector<4x256xf32>
    %286 = vector.shape_cast %285 : vector<4x256xf32> to vector<1x4x256xf32>
    %cst_58 = arith.constant dense<0.000000e+00> : vector<1xf32>
    %287 = vector.multi_reduction <add>, %286, %cst_58 [1, 2] : vector<1x4x256xf32> to vector<1xf32>
    %288 = vector.shape_cast %287 : vector<1xf32> to vector<1x1x1xf32>
    %289 = vector.extract %288[0, 0, 0] : f32 from vector<1x1x1xf32>
    %cst_59 = arith.constant 1.024000e+03 : f32
    %290 = arith.divf %289, %cst_59 : f32
    %cst_60 = arith.constant 9.99999974E-6 : f32
    %291 = arith.addf %290, %cst_60 : f32
    %292 = math.rsqrt %291 : f32
    %293 = vector.broadcast %292 : f32 to vector<8x1xf32>
    %294 = arith.select %241, %293, %283 : vector<8x1xi1>, vector<8x1xf32>
    %295 = arith.mulf %294, %242 : vector<8x1xf32>
    %296 = vector.broadcast %295 : vector<8x1xf32> to vector<8x256xf32>
    %297 = arith.mulf %271, %296 : vector<8x256xf32>
    %298 = vector.broadcast %243 : vector<8x1xf32> to vector<8x256xf32>
    %299 = arith.addf %297, %298 : vector<8x256xf32>
    %c0_61 = arith.constant 0 : index
    %c0_62 = arith.constant 0 : index
    %300 = vector.load %arg4[%c0_61, %c0_62] : memref<16x256xf32, #tpu.memory_space<vmem>>, vector<8x256xf32>
    tpu.vector_store %arg4[%c0_61, %c0_62], %299 {strides = array<i32>} : memref<16x256xf32, #tpu.memory_space<vmem>>, vector<8x256xf32>,
    %301 = vector.extract_strided_slice %1 {offsets = [0, 18], sizes = [8, 1], strides = [1, 1]} : vector<8x22xf32> to vector<8x1xf32>
    %302 = vector.broadcast %170 : vector<1x256xf32> to vector<8x256xf32>
    %303 = vector.broadcast %301 : vector<8x1xf32> to vector<8x256xf32>
    %304 = arith.mulf %302, %303 : vector<8x256xf32>
    %305 = vector.extract_strided_slice %1 {offsets = [0, 19], sizes = [8, 1], strides = [1, 1]} : vector<8x22xf32> to vector<8x1xf32>
    %306 = vector.broadcast %230 : vector<1x256xf32> to vector<8x256xf32>
    %307 = vector.broadcast %305 : vector<8x1xf32> to vector<8x256xf32>
    %308 = arith.mulf %306, %307 : vector<8x256xf32>
    %309 = arith.addf %304, %308 : vector<8x256xf32>
    %cst_63 = arith.constant 0.000000e+00 : f32
    %310 = vector.broadcast %cst_63 : f32 to vector<8x1xf32>
    %311 = vector.extract_strided_slice %309 {offsets = [0, 0], sizes = [4, 256], strides = [1, 1]} : vector<8x256xf32> to vector<4x256xf32>
    %312 = vector.shape_cast %311 : vector<4x256xf32> to vector<1x4x256xf32>
    %cst_64 = arith.constant dense<0.000000e+00> : vector<1xf32>
    %313 = vector.multi_reduction <add>, %312, %cst_64 [1, 2] : vector<1x4x256xf32> to vector<1xf32>
    %314 = vector.shape_cast %313 : vector<1xf32> to vector<1x1x1xf32>
    %315 = vector.extract %314[0, 0, 0] : f32 from vector<1x1x1xf32>
    %cst_65 = arith.constant 1.024000e+03 : f32
    %316 = arith.divf %315, %cst_65 : f32
    %317 = vector.broadcast %316 : f32 to vector<8x1xf32>
    %318 = arith.select %236, %317, %310 : vector<8x1xi1>, vector<8x1xf32>
    %319 = vector.extract_strided_slice %309 {offsets = [4, 0], sizes = [4, 256], strides = [1, 1]} : vector<8x256xf32> to vector<4x256xf32>
    %320 = vector.shape_cast %319 : vector<4x256xf32> to vector<1x4x256xf32>
    %cst_66 = arith.constant dense<0.000000e+00> : vector<1xf32>
    %321 = vector.multi_reduction <add>, %320, %cst_66 [1, 2] : vector<1x4x256xf32> to vector<1xf32>
    %322 = vector.shape_cast %321 : vector<1xf32> to vector<1x1x1xf32>
    %323 = vector.extract %322[0, 0, 0] : f32 from vector<1x1x1xf32>
    %cst_67 = arith.constant 1.024000e+03 : f32
    %324 = arith.divf %323, %cst_67 : f32
    %325 = vector.broadcast %324 : f32 to vector<8x1xf32>
    %326 = arith.select %241, %325, %318 : vector<8x1xi1>, vector<8x1xf32>
    %327 = vector.broadcast %326 : vector<8x1xf32> to vector<8x256xf32>
    %328 = arith.subf %309, %327 : vector<8x256xf32>
    %cst_68 = arith.constant 0.000000e+00 : f32
    %329 = vector.broadcast %cst_68 : f32 to vector<8x1xf32>
    %330 = vector.extract_strided_slice %328 {offsets = [0, 0], sizes = [4, 256], strides = [1, 1]} : vector<8x256xf32> to vector<4x256xf32>
    %331 = arith.mulf %330, %330 : vector<4x256xf32>
    %332 = vector.shape_cast %331 : vector<4x256xf32> to vector<1x4x256xf32>
    %cst_69 = arith.constant dense<0.000000e+00> : vector<1xf32>
    %333 = vector.multi_reduction <add>, %332, %cst_69 [1, 2] : vector<1x4x256xf32> to vector<1xf32>
    %334 = vector.shape_cast %333 : vector<1xf32> to vector<1x1x1xf32>
    %335 = vector.extract %334[0, 0, 0] : f32 from vector<1x1x1xf32>
    %cst_70 = arith.constant 1.024000e+03 : f32
    %336 = arith.divf %335, %cst_70 : f32
    %cst_71 = arith.constant 9.99999974E-6 : f32
    %337 = arith.addf %336, %cst_71 : f32
    %338 = math.rsqrt %337 : f32
    %339 = vector.broadcast %338 : f32 to vector<8x1xf32>
    %340 = arith.select %236, %339, %329 : vector<8x1xi1>, vector<8x1xf32>
    %341 = vector.extract_strided_slice %328 {offsets = [4, 0], sizes = [4, 256], strides = [1, 1]} : vector<8x256xf32> to vector<4x256xf32>
    %342 = arith.mulf %341, %341 : vector<4x256xf32>
    %343 = vector.shape_cast %342 : vector<4x256xf32> to vector<1x4x256xf32>
    %cst_72 = arith.constant dense<0.000000e+00> : vector<1xf32>
    %344 = vector.multi_reduction <add>, %343, %cst_72 [1, 2] : vector<1x4x256xf32> to vector<1xf32>
    %345 = vector.shape_cast %344 : vector<1xf32> to vector<1x1x1xf32>
    %346 = vector.extract %345[0, 0, 0] : f32 from vector<1x1x1xf32>
    %cst_73 = arith.constant 1.024000e+03 : f32
    %347 = arith.divf %346, %cst_73 : f32
    %cst_74 = arith.constant 9.99999974E-6 : f32
    %348 = arith.addf %347, %cst_74 : f32
    %349 = math.rsqrt %348 : f32
    %350 = vector.broadcast %349 : f32 to vector<8x1xf32>
    %351 = arith.select %241, %350, %340 : vector<8x1xi1>, vector<8x1xf32>
    %352 = arith.mulf %351, %242 : vector<8x1xf32>
    %353 = vector.broadcast %352 : vector<8x1xf32> to vector<8x256xf32>
    %354 = arith.mulf %328, %353 : vector<8x256xf32>
    %355 = vector.broadcast %243 : vector<8x1xf32> to vector<8x256xf32>
    %356 = arith.addf %354, %355 : vector<8x256xf32>
    %c8 = arith.constant 8 : index
    %c0_75 = arith.constant 0 : index
    %357 = vector.load %arg4[%c8, %c0_75] : memref<16x256xf32, #tpu.memory_space<vmem>>, vector<8x256xf32>
    tpu.vector_store %arg4[%c8, %c0_75], %356 {strides = array<i32>} : memref<16x256xf32, #tpu.memory_space<vmem>>, vector<8x256xf32>,
    return
  }
  func.func @transform_0(%arg0: i32) -> (i32, i32) {
    %c0_i32 = arith.constant 0 : i32
    %c0_i32_0 = arith.constant 0 : i32
    %c0_i32_1 = arith.constant 0 : i32
    return %c0_i32, %c0_i32_0 : i32, i32
  }
  func.func @transform_1(%arg0: i32) -> (i32, i32) {
    %c0_i32 = arith.constant 0 : i32
    %c0_i32_0 = arith.constant 0 : i32
    %c0_i32_1 = arith.constant 0 : i32
    return %c0_i32, %c0_i32_0 : i32, i32
  }
  func.func @transform_2(%arg0: i32) -> i32 {
    %c0_i32 = arith.constant 0 : i32
    %c0_i32_0 = arith.constant 0 : i32
    return %c0_i32 : i32
  }
  func.func @transform_3(%arg0: i32) -> (i32, i32) {
    %c0_i32 = arith.constant 0 : i32
    %c0_i32_0 = arith.constant 0 : i32
    %c0_i32_1 = arith.constant 0 : i32
    return %c0_i32, %c0_i32_0 : i32, i32
  }
}

</mosaic_0001>

<bundles_post_ra>
// kernel: separable_conv2d_res.1
= control target key start
LH: loop header
LB: loop body
LE: loop exit
PB: predicated region body
PF: predicated region fallthrough
CT: control target
= control target key end

     0   :  { %8 = vsyncpa [#allocation3], 0  ;;  %s1385_s0 = inlined_call_operand.vmem [shape: f32[8,256], index: 0, kind: input, shape index: {}]   ;;  %s1386_s1 = inlined_call_operand.vmem [shape: f32[8,22], index: 1, kind: input, shape index: {}]   ;;  %s1387_s2 = inlined_call_operand.vmem [shape: f32[4], index: 2, kind: input, shape index: {}]   ;;  %s1388_s3 = inlined_call_operand.vmem [shape: f32[16,256], index: 3, kind: output, shape index: {}]  }
   0x1   :  { %s19_s14 = sshll.u32 %s1387_s2, 4  ;;  %s20_s14 = int_to_ptr.vmem [resolvable:$true] %s19_s14 }
   0x2   :  { %s901_s15 = scalar_lea.vmem %s20_s14, 16  ;;  %p906_p1 = scmp.lt.s32.totalorder %s20_s14, %s20_s14 }
   0x3   :  { %p902_p0 = scmp.ne.s32.totalorder %s20_s14, %s901_s15  ;;  %p907_p2 = scmp.lt.s32.totalorder %s901_s15, %s901_s15 }
   0x5   :  { %p908_p3 = por %p907_p2, %p906_p1 }
   0x7   :  { %p909_p4 = pnand %p908_p3, %p902_p0 }
   0x9   :  { %912 = shalt.err (!%p909_p4)
}
   0xa   :  { %s915_s16 = smov [#allocation2]  }
   0xb   :  { %22 = dma.vmem_to_smem %s20_s14, 16, %s915_s16, [#allocation3]  }
   0xc   :  { %913 = dma.done.wait [#allocation3], 16  }
   0xd   :  { %914 = vsyncadd [#allocation3], 4294967280 }
   0xe   :  { %26 = sfence }
   0xf   :  { %v972_v0 = vld [vmem:[%s1386_s1] sm:$0xff]  ;;  %v916_v1 = vmov 2   ;;  %v917_v2 = vmov 0   ;;  %s918_s20 = smov 17   ;;  %v919_v4 = vmov 1   ;;  %v986_v5 = vld [vmem:[%s1385_s0 + $0x8] sm:$0xff]  ;;  %v30_v21 = vlaneseq }
  0x10   :  { %863 = vset.pattern.permute.xlu1 %v916_v1  ;;  %861 = vset.pattern.permute.xlu0 %v917_v2  ;;  %v979_v3 = vld [vmem:[%s1385_s0] sm:$0xff]  ;;  %v920_v6 = vmov 6   ;;  %s921_s23 = smov 16   ;;  %v922_v7 = vmov 3   ;;  %s923_s24 = smov 15   ;;  %v924_v8 = vmov 4  }
  0x11   :  { %102 = vperm.xlu1 %863, %v972_v0   ;;  %52 = vperm.xlu0 %861, %v972_v0   ;;  %v925_v9 = vmov 5   ;;  %s926_s0 = smov 1   ;;  %s927_s25 = smov 127   ;;  %v928_v10 = vmov 8   ;;  %v930_v11 = vmov 7   ;;  %v933_v12 = vmov 9  }
  0x12   :  { %s929_s26 = smov 113   ;;  %s931_s27 = smov 111   ;;  %v1010_v24 = vand.u32 127, %v30_v21 }
  0x13   :  { %s932_s28 = smov 112   ;;  %s322_s2 = sld [smem:[#allocation2]] }
  0x14   :  { %v1013_v27 = vadd.s32 128, %v1010_v24  ;;  %v33_v28 = vand.u32 15, %v1010_v24  ;;  %vm67_vm0 = vcmp.lt.s32.totalorder %v1010_v24, 16  ;;  %vm42_vm1 = vcmp.ge.s32.totalorder %v1010_v24, 16  ;;  %s779_s19 = sld [smem:[#allocation2 + $0x2]] }
  0x15   :  { %35 = vrot.lane.b32.xlu1 %v979_v3, %s918_s20  ;;  %862 = vset.pattern.permute.xlu0 %v919_v4  ;;  %vm39_vm3 = vcmp.lt.s32.totalorder %v1010_v24, 17  ;;  %vm92_vm4 = vcmp.lt.s32.totalorder %v1010_v24, 15  ;;  %vm121_vm9 = vcmp.lt.s32.totalorder %v1010_v24, 1  ;;  %vm162_vm11 = vcmp.lt.s32.totalorder %v1010_v24, 127  ;;  %s781_s21 = sld [smem:[#allocation2 + $0x3]] }
  0x16   :  { %73 = vperm.xlu0 %862, %v972_v0   ;;  %867 = vset.pattern.permute.xlu1 %v920_v6  ;;  %v34_v30 = vand.u32 15, %v1013_v27  ;;  %vm1019_vm2 = vcmp.ge.s32.totalorder %v33_v28, 1  ;;  %vm1027_vm5 = vcmp.lt.s32.totalorder %v33_v28, 15  ;;  %vm187_vm12 = vcmp.lt.s32.totalorder %v1010_v24, 113 }
  0x17   :  { %vm46_vm7 = vmand %vm42_vm1, %vm1019_vm2  ;;  %vm191_vm13 = vcmp.lt.s32.totalorder %v1013_v27, 240  ;;  %vm216_vm15 = vcmp.lt.s32.totalorder %v1010_v24, 112 }
  0x18   :  { %vm1033_vm6 = vcmp.ge.s32.totalorder %v34_v30, 1  ;;  %vm1041_vm8 = vcmp.lt.s32.totalorder %v34_v30, 15  ;;  %vm97_vm10 = vmand %vm42_vm1, %vm1027_vm5 }
  0x19   :  { %37 = vrot.lane.b32.xlu1 %v986_v5, %s918_s20  ;;  %vm193_vm14 = vmand %vm191_vm13, %vm1033_vm6  ;;  %s780_s20 = sld [smem:[#allocation2 + $0x1]] }
  0x1a   :  { %63 = vrot.lane.b32.xlu0 %v979_v3, %s921_s23 }
  0x1b   :  { %864 = vset.pattern.permute.xlu0 %v922_v7 }
  0x1d   :  { %65 = vrot.lane.b32.xlu1 %v986_v5, %s921_s23 }
  0x1e   :  { %127 = vperm.xlu0 %864, %v972_v0  }
  0x21   :  { %88 = vrot.lane.b32.xlu1 %v979_v3, %s923_s24 }
  0x22   :  { %865 = vset.pattern.permute.xlu0 %v924_v8 }
  0x23   :  { %143 = vperm.xlu0 %865, %v972_v0  }
  0x25   :  { %90 = vrot.lane.b32.xlu1 %v986_v5, %s923_s24 }
  0x27   :  { %866 = vset.pattern.permute.xlu0 %v925_v9 }
  0x28   :  { %168 = vperm.xlu0 %866, %v972_v0  }
  0x29   :  { %117 = vrot.lane.b32.xlu1 %v979_v3, %s926_s0 }
  0x2c   :  { %160 = vrot.lane.b32.xlu0 %v986_v5, %s927_s25 }
  0x2d   :  { %119 = vrot.lane.b32.xlu1 %v986_v5, %s926_s0  ;;  %869 = vset.pattern.permute.xlu0 %v928_v10 }
  0x30   :  { %183 = vrot.lane.b32.xlu0 %v979_v3, %s929_s26 }
  0x31   :  { %197 = vperm.xlu1 %867, %v972_v0  }
  0x34   :  { %249 = vperm.xlu0 %869, %v972_v0  }
  0x35   :  { %158 = vrot.lane.b32.xlu1 %v979_v3, %s927_s25 }
  0x36   :  { %868 = vset.pattern.permute.xlu1 %v930_v11 }
  0x38   :  { %237 = vrot.lane.b32.xlu0 %v979_v3, %s931_s27 }
  0x39   :  { %222 = vperm.xlu1 %868, %v972_v0   ;;  %870 = vset.pattern.permute.xlu0 %v933_v12 }
  0x3d   :  { %185 = vrot.lane.b32.xlu1 %v986_v5, %s929_s26 }
  0x41   :  { %212 = vrot.lane.b32.xlu1 %v979_v3, %s932_s28 }
  0x45   :  { %214 = vrot.lane.b32.xlu1 %v986_v5, %s932_s28 }
  0x49   :  { %239 = vrot.lane.b32.xlu1 %v986_v5, %s931_s27 }
  0x8c   :  { %v103_v13 = vpop.permute.xlu1 %102  ;;  %v53_v14 = vpop.permute.xlu0 %52 }
  0x90   :  { %v36_v15 = vpop.permute.xlu1 %35 }
  0x91   :  { %v74_v17 = vpop.permute.xlu0 %73 }
  0x94   :  { %v38_v16 = vpop.permute.xlu1 %37 }
  0x95   :  { %v64_v19 = vpop.permute.xlu0 %63  ;;  %v40_v38 = vsel %vm39_vm3, %v36_v15, %v38_v16  ;;  %v41_v39 = vsel %vm39_vm3, %v38_v16, %v36_v15  ;;  %vm279_vm3 = vcmask 1040384  }
  0x96   :  { %v1058_v48 = vsel %vm46_vm7, %v41_v39, 0.0  ;;  %v1062_v49 = vsel %vm1033_vm6, %v40_v38, 0.0 }
  0x97   :  { %v55_v57 = vmul.f32 %v53_v14, %v1058_v48  ;;  %v56_v58 = vmul.f32 %v53_v14, %v1062_v49 }
  0x98   :  { %v66_v18 = vpop.permute.xlu1 %65 }
  0x99   :  { %v128_v23 = vpop.permute.xlu0 %127  ;;  %v69_v35 = vsel %vm67_vm0, %v66_v18, %v64_v19  ;;  %v1052_v43 = vsel %vm67_vm0, %v64_v19, %v66_v18  ;;  %vm241_vm0 = vcmp.lt.s32.totalorder %v1010_v24, 111 }
  0x9a   :  { %v1056_v44 = vsel %vm42_vm1, %v69_v35, 0.0  ;;  %v77_v53 = vmul.f32 %v74_v17, %v1052_v43  ;;  %vm245_vm1 = vmand %vm191_vm13, %vm1041_vm8 }
  0x9b   :  { %v76_v52 = vmul.f32 %v74_v17, %v1056_v44 }
  0x9c   :  { %v89_v20 = vpop.permute.xlu1 %88  ;;  %v79_v62 = vadd.f32 %v77_v53, %v56_v58 }
  0x9d   :  { %v78_v61 = vadd.f32 %v76_v52, %v55_v57 }
  0x9e   :  { %v144_v26 = vpop.permute.xlu0 %143 }
  0x9f   :  { %v146_v10 = vmul.f32 %v144_v26, %v979_v3  ;;  %v147_v11 = vmul.f32 %v144_v26, %v986_v5 }
  0xa0   :  { %v91_v22 = vpop.permute.xlu1 %90 }
  0xa1   :  { %v93_v40 = vsel %vm92_vm4, %v89_v20, %v91_v22  ;;  %v94_v41 = vsel %vm92_vm4, %v91_v22, %v89_v20 }
  0xa2   :  { %v1064_v50 = vsel %vm97_vm10, %v94_v41, 0.0  ;;  %v1068_v51 = vsel %vm1041_vm8, %v93_v40, 0.0 }
  0xa3   :  { %v169_v32 = vpop.permute.xlu0 %168  ;;  %v105_v59 = vmul.f32 %v103_v13, %v1064_v50  ;;  %v106_v60 = vmul.f32 %v103_v13, %v1068_v51 }
  0xa4   :  { %v118_v25 = vpop.permute.xlu1 %117 }
  0xa5   :  { %v107_v8 = vadd.f32 %v105_v59, %v78_v61  ;;  %v108_v9 = vadd.f32 %v106_v60, %v79_v62 }
  0xa7   :  { %v161_v47 = vpop.permute.xlu0 %160 }
  0xa8   :  { %v120_v29 = vpop.permute.xlu1 %119 }
  0xa9   :  { %v122_v45 = vsel %vm121_vm9, %v118_v25, %v120_v29  ;;  %v123_v46 = vsel %vm121_vm9, %v120_v29, %v118_v25 }
  0xaa   :  { %v1074_v55 = vsel %vm1019_vm2, %v123_v46, 0.0  ;;  %v1078_v56 = vsel %vm1033_vm6, %v122_v45, 0.0 }
  0xab   :  { %v130_v63 = vmul.f32 %v128_v23, %v1074_v55  ;;  %v131_v1 = vmul.f32 %v128_v23, %v1078_v56  ;;  %v184_v2 = vpop.permute.xlu0 %183 }
  0xac   :  { %v1023_v33 = vpop.permute.xlu1 %197 }
  0xad   :  { %v132_v14 = vadd.f32 %v130_v63, %v107_v8  ;;  %v133_v15 = vadd.f32 %v131_v1, %v108_v9 }
  0xaf   :  { %v250_v19 = vpop.permute.xlu0 %249  ;;  %v148_v26 = vadd.f32 %v146_v10, %v132_v14  ;;  %v149_v28 = vadd.f32 %v147_v11, %v133_v15 }
  0xb0   :  { %v159_v42 = vpop.permute.xlu1 %158 }
  0xb1   :  { %v163_v6 = vsel %vm162_vm11, %v159_v42, %v161_v47  ;;  %v164_v7 = vsel %vm162_vm11, %v161_v47, %v159_v42 }
  0xb2   :  { %v1101_v16 = vsel %vm1027_vm5, %v163_v6, 0.0  ;;  %v1105_v17 = vsel %vm1041_vm8, %v164_v7, 0.0 }
  0xb3   :  { %v171_v23 = vmul.f32 %v169_v32, %v1101_v16  ;;  %v172_v25 = vmul.f32 %v169_v32, %v1105_v17  ;;  %v238_v39 = vpop.permute.xlu0 %237 }
  0xb4   :  { %v223_v54 = vpop.permute.xlu1 %222 }
  0xb5   :  { %v173_v32 = vadd.f32 %v171_v23, %v148_v26  ;;  %v174_v40 = vadd.f32 %v172_v25, %v149_v28 }
  0xb8   :  { %v186_v4 = vpop.permute.xlu1 %185 }
  0xb9   :  { %v188_v12 = vsel %vm187_vm12, %v184_v2, %v186_v4  ;;  %v189_v13 = vsel %vm187_vm12, %v186_v4, %v184_v2 }
  0xba   :  { %v1109_v20 = vsel %vm1019_vm2, %v188_v12, 0.0  ;;  %v1111_v22 = vsel %vm193_vm14, %v189_v13, 0.0  ;;  %vm264_vm2 = vcmask 1043456  }
  0xbb   :  { %v200_v30 = vmul.f32 %v1023_v33, %v1109_v20  ;;  %v201_v35 = vmul.f32 %v1023_v33, %v1111_v22 }
  0xbc   :  { %v213_v18 = vpop.permute.xlu1 %212 }
  0xbd   :  { %v202_v45 = vadd.f32 %v200_v30, %v173_v32  ;;  %v203_v46 = vadd.f32 %v201_v35, %v174_v40 }
  0xc0   :  { %v215_v29 = vpop.permute.xlu1 %214 }
  0xc1   :  { %v1120_v31 = vsel %vm216_vm15, %v213_v18, %v215_v29  ;;  %v218_v36 = vsel %vm216_vm15, %v215_v29, %v213_v18 }
  0xc2   :  { %v1124_v38 = vsel %vm191_vm13, %v218_v36, 0.0  ;;  %v225_v41 = vmul.f32 %v223_v54, %v1120_v31 }
  0xc3   :  { %v226_v42 = vmul.f32 %v223_v54, %v1124_v38 }
  0xc4   :  { %v240_v33 = vpop.permute.xlu1 %239  ;;  %v227_v57 = vadd.f32 %v225_v41, %v202_v45 }
  0xc5   :  { %v242_v47 = vsel %vm241_vm0, %v238_v39, %v240_v33  ;;  %v243_v52 = vsel %vm241_vm0, %v240_v33, %v238_v39  ;;  %v228_v58 = vadd.f32 %v226_v42, %v203_v46 }
  0xc6   :  { %v1135_v53 = vsel %vm1027_vm5, %v242_v47, 0.0  ;;  %v1137_v24 = vsel %vm245_vm1, %v243_v52, 0.0  ;;  %v934_v47 = vmov 10  }
  0xc7   :  { %v252_v54 = vmul.f32 %v250_v19, %v1135_v53  ;;  %v253_v37 = vmul.f32 %v250_v19, %v1137_v24  ;;  %871 = vset.pattern.permute.xlu1 %v934_v47 }
  0xc9   :  { %v254_v27 = vadd.f32 %v252_v54, %v227_v57  ;;  %v255_v59 = vadd.f32 %v253_v37, %v228_v58 }
  0xcb   :  { %v265_v60 = vsel %vm264_vm2, %v254_v27, 0.0  ;;  %v272_v61 = vsel %vm264_vm2, %v255_v59, 0.0  ;;  %v334_v62 = vrot.slane %v254_v27, 4  ;;  %v335_v63 = vrot.slane %v255_v59, 4 }
  0xcc   :  { %v266_v34 = vrot.slane %v265_v60, 4  ;;  %v273_v1 = vrot.slane %v272_v61, 4 }
  0xcd   :  { %v338_v2 = vsel %vm264_vm2, %v334_v62, 0.0  ;;  %v345_v4 = vsel %vm264_vm2, %v335_v63, 0.0 }
  0xce   :  { %v267_v6 = vadd.f32 %v266_v34, %v265_v60  ;;  %v274_v7 = vadd.f32 %v273_v1, %v272_v61  ;;  %v339_v8 = vrot.slane %v338_v2, 4  ;;  %v346_v9 = vrot.slane %v345_v4, 4 }
  0xd0   :  { %v268_v10 = vrot.slane %v267_v6, 2  ;;  %v275_v11 = vrot.slane %v274_v7, 2  ;;  %v340_v12 = vadd.f32 %v339_v8, %v338_v2  ;;  %v347_v13 = vadd.f32 %v346_v9, %v345_v4 }
  0xd1   :  { %v937_v8 = vmov 13   ;;  %v938_v9 = vmov 14  }
  0xd2   :  { %v269_v14 = vadd.f32 %v268_v10, %v267_v6  ;;  %v276_v15 = vadd.f32 %v275_v11, %v274_v7  ;;  %v341_v18 = vrot.slane %v340_v12, 2  ;;  %v348_v19 = vrot.slane %v347_v13, 2 }
  0xd3   :  { %v935_v6 = vmov 11   ;;  %v936_v7 = vmov 12   ;;  %v939_v10 = vmov 15   ;;  %v940_v11 = vmov 16  }
  0xd4   :  { %v270_v23 = vrot.slane %v269_v14, 1  ;;  %v277_v25 = vrot.slane %v276_v15, 1  ;;  %v342_v26 = vadd.f32 %v341_v18, %v340_v12  ;;  %v349_v28 = vadd.f32 %v348_v19, %v347_v13 }
  0xd5   :  { %v941_v12 = vmov 17   ;;  %v942_v13 = vmov 18  }
  0xd6   :  { %v271_v29 = vadd.f32 %v270_v23, %v269_v14  ;;  %v278_v30 = vadd.f32 %v277_v25, %v276_v15  ;;  %v343_v35 = vrot.slane %v342_v26, 1  ;;  %v350_v36 = vrot.slane %v349_v28, 1 }
  0xd8   :  { %v280_v39 = vsel %vm279_vm3, %v271_v29, 0.0  ;;  %v281_v32 = vsel %vm279_vm3, %v278_v30, 0.0  ;;  %v1147_v40 = vadd.f32 %v343_v35, %v342_v26  ;;  %v1149_v41 = vadd.f32 %v350_v36, %v349_v28 }
  0xd9   :  { %v282_v42 = vadd.f32 %v281_v32, %v280_v39 }
  0xda   :  { %v352_v33 = vsel %vm279_vm3, %v1147_v40, 0.0  ;;  %v353_v45 = vsel %vm279_vm3, %v1149_v41, 0.0 }
  0xdb   :  { %283 = vadd.xlane.f32.xlu0 %v282_v42  ;;  %v354_v46 = vadd.f32 %v353_v45, %v352_v33 }
  0xdf   :  { %355 = vadd.xlane.f32.xlu0 %v354_v46 }
  0xf5   :  { %58 = vperm.xlu0 %870, %v972_v0  }
 0x164   :  { %v284_v52 = vpop.xlane.xlu0 %283 }
 0x165   :  { %v285_v57 = vrot.slane %v284_v52, 4 }
 0x167   :  { %v286_v58 = vadd.f32 %v285_v57, %v284_v52 }
 0x168   :  { %v356_v35 = vpop.xlane.xlu0 %355 }
 0x169   :  { %v287_v54 = vrot.slane %v286_v58, 2 }
 0x16b   :  { %v288_v37 = vadd.f32 %v287_v54, %v286_v58 }
 0x16d   :  { %v289_v27 = vrot.slane %v288_v37, 1 }
 0x16f   :  { %v290_v59 = vadd.f32 %v289_v27, %v288_v37 }
 0x170   :  { %v59_v39 = vpop.permute.xlu0 %58 }
 0x171   :  { %782 = vpush %v290_v59  ;;  %v61_v45 = vmul.f32 %v59_v39, %v1058_v48  ;;  %v62_v46 = vmul.f32 %v59_v39, %v1062_v49 }
 0x1a2   :  { %s783_s29 = spop %782 }
 0x1a3   :  { %s294_s30 = smul.f32 0.00390625, %s783_s29 }
 0x1a5   :  { %v295_v60 = vstv %s294_s30 }
 0x1a6   :  { %v1156_v61 = vsub.f32 %v271_v29, %v295_v60  ;;  %v1158_v62 = vsub.f32 %v278_v30, %v295_v60 }
 0x1a8   :  { %v298_v63 = vmul.f32 %v1156_v61, %v1156_v61  ;;  %v299_v34 = vmul.f32 %v1158_v62, %v1158_v62 }
 0x1aa   :  { %v300_v1 = vsel %vm279_vm3, %v298_v63, 0.0  ;;  %v301_v2 = vsel %vm279_vm3, %v299_v34, 0.0 }
 0x1ab   :  { %v302_v4 = vadd.f32 %v301_v2, %v300_v1 }
 0x1ad   :  { %303 = vadd.xlane.f32.xlu1 %v302_v4 }
 0x1be   :  { %81 = vperm.xlu1 %871, %v972_v0  }
 0x1c2   :  { %872 = vset.pattern.permute.xlu1 %v935_v6 }
 0x1c3   :  { %110 = vperm.xlu1 %872, %v972_v0  }
 0x1c7   :  { %873 = vset.pattern.permute.xlu1 %v936_v7 }
 0x1c8   :  { %135 = vperm.xlu1 %873, %v972_v0  }
 0x1cc   :  { %874 = vset.pattern.permute.xlu1 %v937_v8 }
 0x1cd   :  { %151 = vperm.xlu1 %874, %v972_v0  }
 0x1d1   :  { %875 = vset.pattern.permute.xlu1 %v938_v9 }
 0x1d2   :  { %176 = vperm.xlu1 %875, %v972_v0  }
 0x1d6   :  { %876 = vset.pattern.permute.xlu1 %v939_v10 }
 0x1d7   :  { %205 = vperm.xlu1 %876, %v972_v0  }
 0x1db   :  { %877 = vset.pattern.permute.xlu1 %v940_v11 }
 0x1dc   :  { %230 = vperm.xlu1 %877, %v972_v0  }
 0x1e0   :  { %878 = vset.pattern.permute.xlu1 %v941_v12 }
 0x1e1   :  { %257 = vperm.xlu1 %878, %v972_v0  }
 0x1e5   :  { %879 = vset.pattern.permute.xlu1 %v942_v13 }
 0x236   :  { %v304_v14 = vpop.xlane.xlu1 %303 }
 0x237   :  { %v305_v15 = vrot.slane %v304_v14, 4 }
 0x239   :  { %v306_v18 = vadd.f32 %v305_v15, %v304_v14 }
 0x23a   :  { %v82_v19 = vpop.permute.xlu1 %81 }
 0x23b   :  { %v307_v23 = vrot.slane %v306_v18, 2  ;;  %v84_v32 = vmul.f32 %v82_v19, %v1056_v44  ;;  %v85_v42 = vmul.f32 %v82_v19, %v1052_v43 }
 0x23d   :  { %v308_v25 = vadd.f32 %v307_v23, %v306_v18  ;;  %v86_v57 = vadd.f32 %v84_v32, %v61_v45  ;;  %v87_v58 = vadd.f32 %v85_v42, %v62_v46 }
 0x23e   :  { %v111_v26 = vpop.permute.xlu1 %110 }
 0x23f   :  { %v309_v28 = vrot.slane %v308_v25, 1  ;;  %v113_v47 = vmul.f32 %v111_v26, %v1064_v50  ;;  %v114_v52 = vmul.f32 %v111_v26, %v1068_v51 }
 0x241   :  { %v310_v29 = vadd.f32 %v309_v28, %v308_v25  ;;  %v115_v59 = vadd.f32 %v113_v47, %v86_v57  ;;  %v116_v44 = vadd.f32 %v114_v52, %v87_v58 }
 0x243   :  { %784 = vpush %v310_v29  ;;  %v136_v30 = vpop.permute.xlu1 %135 }
 0x244   :  { %v138_v54 = vmul.f32 %v136_v30, %v1074_v55  ;;  %v139_v37 = vmul.f32 %v136_v30, %v1078_v56 }
 0x246   :  { %v140_v48 = vadd.f32 %v138_v54, %v115_v59  ;;  %v141_v63 = vadd.f32 %v139_v37, %v116_v44 }
 0x248   :  { %v152_v36 = vpop.permute.xlu1 %151 }
 0x249   :  { %v154_v43 = vmul.f32 %v152_v36, %v979_v3  ;;  %v155_v60 = vmul.f32 %v152_v36, %v986_v5  ;;  %v357_v36 = vrot.slane %v356_v35, 4 }
 0x24b   :  { %v156_v51 = vadd.f32 %v154_v43, %v140_v48  ;;  %v157_v34 = vadd.f32 %v155_v60, %v141_v63  ;;  %v358_v39 = vadd.f32 %v357_v36, %v356_v35 }
 0x24d   :  { %v177_v33 = vpop.permute.xlu1 %176  ;;  %v359_v42 = vrot.slane %v358_v39, 2 }
 0x24e   :  { %v179_v49 = vmul.f32 %v177_v33, %v1101_v16  ;;  %v180_v50 = vmul.f32 %v177_v33, %v1105_v17 }
 0x24f   :  { %v360_v33 = vadd.f32 %v359_v42, %v358_v39  ;;  %v943_v39 = vmov 19  }
 0x250   :  { %v181_v2 = vadd.f32 %v179_v49, %v156_v51  ;;  %v182_v4 = vadd.f32 %v180_v50, %v157_v34  ;;  %880 = vset.pattern.permute.xlu0 %v943_v39 }
 0x251   :  { %v361_v45 = vrot.slane %v360_v33, 1 }
 0x252   :  { %v206_v27 = vpop.permute.xlu1 %205 }
 0x253   :  { %v208_v1 = vmul.f32 %v206_v27, %v1109_v20  ;;  %v209_v55 = vmul.f32 %v206_v27, %v1111_v22  ;;  %v362_v47 = vadd.f32 %v361_v45, %v360_v33 }
 0x255   :  { %v210_v5 = vadd.f32 %v208_v1, %v181_v2  ;;  %v211_v7 = vadd.f32 %v209_v55, %v182_v4 }
 0x257   :  { %v231_v56 = vpop.permute.xlu1 %230 }
 0x258   :  { %v233_v6 = vmul.f32 %v231_v56, %v1120_v31  ;;  %v234_v3 = vmul.f32 %v231_v56, %v1124_v38 }
 0x25a   :  { %v235_v9 = vadd.f32 %v233_v6, %v210_v5  ;;  %v236_v16 = vadd.f32 %v234_v3, %v211_v7 }
 0x25c   :  { %v258_v8 = vpop.permute.xlu1 %257 }
 0x25d   :  { %v260_v17 = vmul.f32 %v258_v8, %v1135_v53  ;;  %v261_v10 = vmul.f32 %v258_v8, %v1137_v24 }
 0x25f   :  { %v1192_v11 = vadd.f32 %v260_v17, %v235_v9  ;;  %v1194_v20 = vadd.f32 %v261_v10, %v236_v16 }
 0x261   :  { %v400_v22 = vsel %vm264_vm2, %v1192_v11, 0.0  ;;  %v407_v31 = vsel %vm264_vm2, %v1194_v20, 0.0  ;;  %v468_v6 = vrot.slane %v1192_v11, 4  ;;  %v469_v3 = vrot.slane %v1194_v20, 4 }
 0x262   :  { %v401_v38 = vrot.slane %v400_v22, 4  ;;  %v408_v12 = vrot.slane %v407_v31, 4 }
 0x263   :  { %v472_v5 = vsel %vm264_vm2, %v468_v6, 0.0  ;;  %v479_v7 = vsel %vm264_vm2, %v469_v3, 0.0 }
 0x264   :  { %v402_v13 = vadd.f32 %v401_v38, %v400_v22  ;;  %v409_v14 = vadd.f32 %v408_v12, %v407_v31  ;;  %v473_v8 = vrot.slane %v472_v5, 4  ;;  %v480_v9 = vrot.slane %v479_v7, 4 }
 0x266   :  { %v403_v15 = vrot.slane %v402_v13, 2  ;;  %v410_v18 = vrot.slane %v409_v14, 2  ;;  %v474_v16 = vadd.f32 %v473_v8, %v472_v5  ;;  %v481_v17 = vadd.f32 %v480_v9, %v479_v7 }
 0x268   :  { %v404_v19 = vadd.f32 %v403_v15, %v402_v13  ;;  %v411_v53 = vadd.f32 %v410_v18, %v409_v14  ;;  %v475_v10 = vrot.slane %v474_v16, 2  ;;  %v482_v22 = vrot.slane %v481_v17, 2 }
 0x26a   :  { %v405_v23 = vrot.slane %v404_v19, 1  ;;  %v412_v24 = vrot.slane %v411_v53, 1  ;;  %v476_v31 = vadd.f32 %v475_v10, %v474_v16  ;;  %v483_v38 = vadd.f32 %v482_v22, %v481_v17 }
 0x26c   :  { %v1200_v25 = vadd.f32 %v405_v23, %v404_v19  ;;  %v1202_v26 = vadd.f32 %v412_v24, %v411_v53  ;;  %v477_v12 = vrot.slane %v476_v31, 1  ;;  %v484_v11 = vrot.slane %v483_v38, 1 }
 0x26e   :  { %v414_v28 = vsel %vm279_vm3, %v1200_v25, 0.0  ;;  %v415_v29 = vsel %vm279_vm3, %v1202_v26, 0.0  ;;  %v478_v19 = vadd.f32 %v477_v12, %v476_v31  ;;  %v485_v53 = vadd.f32 %v484_v11, %v483_v38 }
 0x26f   :  { %v416_v30 = vadd.f32 %v415_v29, %v414_v28 }
 0x270   :  { %v486_v29 = vsel %vm279_vm3, %v478_v19, 0.0 }
 0x271   :  { %417 = vadd.xlane.f32.xlu1 %v416_v30  ;;  %v487_v30 = vsel %vm279_vm3, %v485_v53, 0.0 }
 0x272   :  { %v488_v36 = vadd.f32 %v487_v30, %v486_v29 }
 0x274   :  { %s785_s4 = spop %784 }
 0x275   :  { %s314_s5 = smul.f32 0.00390625, %s785_s4 }
 0x277   :  { %s315_s6 = sadd.f32 1e-05, %s314_s5 }
 0x279   :  { %v316_v32 = vstv %s315_s6 }
 0x27a   :  { %884 = vrsqrt.f32 %v316_v32 }
 0x282   :  { %543 = vperm.xlu1 %879, %v972_v0  }
 0x287   :  { %v885_v46 = vpop.eup %884 }
 0x288   :  { %786 = vpush %v885_v46 }
 0x289   :  { %788 = vpush %v362_v47 }
 0x2b9   :  { %s1209_s7 = spop %786 }
 0x2ba   :  { %s789_s8 = spop %788 }
 0x2bb   :  { %s366_s9 = smul.f32 0.00390625, %s789_s8 }
 0x2bd   :  { %v367_v52 = vstv %s366_s9 }
 0x2be   :  { %v1212_v57 = vsub.f32 %v1147_v40, %v367_v52  ;;  %v1215_v35 = vsub.f32 %v1149_v41, %v367_v52 }
 0x2c0   :  { %v370_v58 = vmul.f32 %v1212_v57, %v1212_v57  ;;  %v371_v54 = vmul.f32 %v1215_v35, %v1215_v35 }
 0x2c2   :  { %v372_v37 = vsel %vm279_vm3, %v370_v58, 0.0  ;;  %v373_v27 = vsel %vm279_vm3, %v371_v54, 0.0 }
 0x2c3   :  { %v374_v59 = vadd.f32 %v373_v27, %v372_v37 }
 0x2c5   :  { %375 = vadd.xlane.f32.xlu0 %v374_v59 }
 0x2fa   :  { %v418_v49 = vpop.xlane.xlu1 %417 }
 0x2fb   :  { %v419_v50 = vrot.slane %v418_v49, 4 }
 0x2fd   :  { %v420_v51 = vadd.f32 %v419_v50, %v418_v49  ;;  %v1243_v49 = vstv %s779_s19 }
 0x2fe   :  { %v1257_v5 = vpop.permute.xlu1 %543 }
 0x2ff   :  { %v421_v1 = vrot.slane %v420_v51, 2 }
 0x301   :  { %v422_v55 = vadd.f32 %v421_v1, %v420_v51  ;;  %v1245_v51 = vstv %s780_s20 }
 0x303   :  { %v423_v56 = vrot.slane %v422_v55, 1 }
 0x305   :  { %v424_v4 = vadd.f32 %v423_v56, %v422_v55  ;;  %v1248_v55 = vstv %s781_s21 }
 0x34e   :  { %v376_v44 = vpop.xlane.xlu0 %375 }
 0x34f   :  { %v377_v43 = vrot.slane %v376_v44, 4 }
 0x351   :  { %v378_v60 = vadd.f32 %v377_v43, %v376_v44  ;;  %v319_v43 = vstv %s1209_s7 }
 0x353   :  { %v379_v40 = vrot.slane %v378_v60, 2 }
 0x355   :  { %v380_v48 = vadd.f32 %v379_v40, %v378_v60  ;;  %v320_v60 = vmul.f32 %v319_v43, %v1156_v61  ;;  %v321_v40 = vmul.f32 %v319_v43, %v1158_v62 }
 0x357   :  { %v381_v63 = vrot.slane %v380_v48, 1 }
 0x359   :  { %v382_v41 = vadd.f32 %v381_v63, %v380_v48  ;;  %v1239_v48 = vstv %s322_s2 }
 0x35a   :  { %v324_v63 = vmul.f32 %v1239_v48, %v320_v60 }
 0x35b   :  { %790 = vpush %v382_v41  ;;  %v325_v41 = vmul.f32 %v1239_v48, %v321_v40 }
 0x35c   :  { %v328_v61 = vadd.f32 %v1243_v49, %v324_v63 }
 0x35d   :  { %v329_v62 = vadd.f32 %v1243_v49, %v325_v41 }
 0x35e   :  { %v330_v9 = vmax.f32 %v328_v61, 0.0 }
 0x35f   :  { %v331_v22 = vmax.f32 %v329_v62, 0.0 }
 0x360   :  { %v546_v12 = vmul.f32 %v1257_v5, %v330_v9 }
 0x38c   :  { %s791_s10 = spop %790 }
 0x38d   :  { %s386_s11 = smul.f32 0.00390625, %s791_s10 }
 0x38f   :  { %s387_s12 = sadd.f32 1e-05, %s386_s11 }
 0x391   :  { %v388_v34 = vstv %s387_s12 }
 0x392   :  { %886 = vrsqrt.f32 %v388_v34 }
 0x39f   :  { %v887_v2 = vpop.eup %886 }
 0x3a0   :  { %792 = vpush %v887_v2 }
 0x3a1   :  { %794 = vpush %v424_v4 }
 0x3d1   :  { %s1227_s13 = spop %792 }
 0x3d2   :  { %s795_s14 = spop %794  ;;  %v391_v61 = vstv %s1227_s13 }
 0x3d3   :  { %s428_s15 = smul.f32 0.00390625, %s795_s14  ;;  %v392_v62 = vmul.f32 %v391_v61, %v1212_v57 }
 0x3d5   :  { %v429_v13 = vstv %s428_s15 }
 0x3d6   :  { %v430_v20 = vsub.f32 %v1200_v25, %v429_v13  ;;  %v431_v14 = vsub.f32 %v1202_v26, %v429_v13 }
 0x3d8   :  { %v432_v15 = vmul.f32 %v430_v20, %v430_v20  ;;  %v433_v18 = vmul.f32 %v431_v14, %v431_v14 }
 0x3da   :  { %v434_v23 = vsel %vm279_vm3, %v432_v15, 0.0  ;;  %v435_v24 = vsel %vm279_vm3, %v433_v18, 0.0 }
 0x3db   :  { %v436_v28 = vadd.f32 %v435_v24, %v434_v23 }
 0x3dd   :  { %437 = vadd.xlane.f32.xlu0 %v436_v28 }
 0x3e1   :  { %489 = vadd.xlane.f32.xlu0 %v488_v36 }
 0x3f7   :  { %549 = vperm.xlu0 %880, %v972_v0  }
 0x466   :  { %v438_v25 = vpop.xlane.xlu0 %437 }
 0x467   :  { %v439_v26 = vrot.slane %v438_v25, 4 }
 0x469   :  { %v440_v32 = vadd.f32 %v439_v26, %v438_v25 }
 0x46a   :  { %v490_v47 = vpop.xlane.xlu0 %489 }
 0x46b   :  { %v441_v42 = vrot.slane %v440_v32, 2  ;;  %v491_v52 = vrot.slane %v490_v47, 4 }
 0x46d   :  { %v442_v33 = vadd.f32 %v441_v42, %v440_v32  ;;  %v492_v58 = vadd.f32 %v491_v52, %v490_v47 }
 0x46f   :  { %v443_v45 = vrot.slane %v442_v33, 1  ;;  %v493_v37 = vrot.slane %v492_v58, 2 }
 0x471   :  { %v444_v46 = vadd.f32 %v443_v45, %v442_v33  ;;  %v494_v27 = vadd.f32 %v493_v37, %v492_v58 }
 0x472   :  { %v1265_v10 = vpop.permute.xlu0 %549 }
 0x473   :  { %796 = vpush %v444_v46  ;;  %v495_v0 = vrot.slane %v494_v27, 1 }
 0x475   :  { %v496_v44 = vadd.f32 %v495_v0, %v494_v27 }
 0x4a4   :  { %s797_s16 = spop %796 }
 0x4a5   :  { %s448_s17 = smul.f32 0.00390625, %s797_s16 }
 0x4a7   :  { %s449_s18 = sadd.f32 1e-05, %s448_s17 }
 0x4a9   :  { %v450_v54 = vstv %s449_s18 }
 0x4aa   :  { %888 = vrsqrt.f32 %v450_v54 }
 0x4b7   :  { %v889_v59 = vpop.eup %888 }
 0x4b8   :  { %798 = vpush %v889_v59 }
 0x4b9   :  { %800 = vpush %v496_v44 }
 0x4e9   :  { %s799_s22 = spop %798 }
 0x4ea   :  { %v453_v50 = vstv %s799_s22  ;;  %s801_s23 = spop %800 }
 0x4eb   :  { %v454_v34 = vmul.f32 %v453_v50, %v430_v20  ;;  %v455_v1 = vmul.f32 %v453_v50, %v431_v14  ;;  %s500_s24 = smul.f32 0.00390625, %s801_s23  ;;  %v547_v20 = vmul.f32 %v1257_v5, %v331_v22 }
 0x4ed   :  { %v458_v56 = vmul.f32 %v1245_v51, %v454_v34  ;;  %v459_v2 = vmul.f32 %v1245_v51, %v455_v1  ;;  %v501_v4 = vstv %s500_s24 }
 0x4ee   :  { %v1253_v6 = vsub.f32 %v478_v19, %v501_v4  ;;  %v1255_v3 = vsub.f32 %v485_v53, %v501_v4 }
 0x4ef   :  { %v462_v7 = vadd.f32 %v1248_v55, %v458_v56  ;;  %v463_v8 = vadd.f32 %v1248_v55, %v459_v2  ;;  %v393_v56 = vmul.f32 %v391_v61, %v1215_v35  ;;  %v394_v2 = vmul.f32 %v392_v62, %v1239_v48 }
 0x4f0   :  { %v504_v16 = vmul.f32 %v1253_v6, %v1253_v6  ;;  %v505_v17 = vmul.f32 %v1255_v3, %v1255_v3  ;;  %v944_v62 = vmov 20  }
 0x4f1   :  { %v464_v31 = vmax.f32 %v462_v7, 0.0  ;;  %v465_v38 = vmax.f32 %v463_v8, 0.0  ;;  %v395_v4 = vmul.f32 %v393_v56, %v1239_v48  ;;  %v1291_v7 = vshrl.u32 %v30_v21, 7  ;;  %881 = vset.pattern.permute.xlu1 %v944_v62  ;;  %882 = vset.pattern.permute.xlu0 %v944_v62 }
 0x4f2   :  { %v506_v11 = vsel %vm279_vm3, %v504_v16, 0.0  ;;  %v507_v13 = vsel %vm279_vm3, %v505_v17, 0.0  ;;  %v396_v8 = vadd.f32 %v394_v2, %v1243_v49 }
 0x4f3   :  { %v552_v14 = vmul.f32 %v1265_v10, %v464_v31  ;;  %v553_v15 = vmul.f32 %v1265_v10, %v465_v38  ;;  %v508_v18 = vadd.f32 %v507_v13, %v506_v11  ;;  %v397_v16 = vadd.f32 %v395_v4, %v1243_v49 }
 0x4f4   :  { %vm537_vm4 = vcmp.lt.s32.totalorder %v1291_v7, 4  ;;  %vm539_vm5 = vcmp.ge.s32.totalorder %v1291_v7, 4  ;;  %v398_v22 = vmax.f32 %v396_v8, 0.0 }
 0x4f5   :  { %509 = vadd.xlane.f32.xlu1 %v508_v18  ;;  %v1273_v19 = vadd.f32 %v552_v14, %v546_v12  ;;  %v1275_v53 = vadd.f32 %v553_v15, %v547_v20 }
 0x4f6   :  { %v664_v18 = vmul.f32 %v1257_v5, %v398_v22 }
 0x4f7   :  { %v556_v23 = vsel %vm264_vm2, %v1273_v19, 0.0  ;;  %v557_v24 = vsel %vm264_vm2, %v1275_v53, 0.0  ;;  %v575_v28 = vrot.slane %v1273_v19, 4  ;;  %v576_v29 = vrot.slane %v1275_v53, 4 }
 0x4f8   :  { %v558_v30 = vadd.f32 %v557_v24, %v556_v23 }
 0x4f9   :  { %v579_v36 = vsel %vm264_vm2, %v575_v28, 0.0  ;;  %v580_v39 = vsel %vm264_vm2, %v576_v29, 0.0 }
 0x4fa   :  { %559 = vadd.xlane.f32.xlu0 %v558_v30  ;;  %v581_v25 = vadd.f32 %v580_v39, %v579_v36 }
 0x4fc   :  { %582 = vadd.xlane.f32.xlu1 %v581_v25 }
 0x57e   :  { %v510_v26 = vpop.xlane.xlu1 %509 }
 0x57f   :  { %v511_v32 = vrot.slane %v510_v26, 4 }
 0x581   :  { %v512_v42 = vadd.f32 %v511_v32, %v510_v26 }
 0x583   :  { %v513_v33 = vrot.slane %v512_v42, 2  ;;  %v560_v52 = vpop.xlane.xlu0 %559 }
 0x584   :  { %v561_v54 = vrot.slane %v560_v52, 4 }
 0x585   :  { %v514_v45 = vadd.f32 %v513_v33, %v512_v42  ;;  %v583_v58 = vpop.xlane.xlu1 %582 }
 0x586   :  { %v584_v37 = vrot.slane %v583_v58, 4  ;;  %v562_v27 = vadd.f32 %v561_v54, %v560_v52 }
 0x587   :  { %v515_v46 = vrot.slane %v514_v45, 1 }
 0x588   :  { %v585_v0 = vadd.f32 %v584_v37, %v583_v58  ;;  %v563_v44 = vrot.slane %v562_v27, 2 }
 0x589   :  { %v516_v47 = vadd.f32 %v515_v46, %v514_v45 }
 0x58a   :  { %v586_v43 = vrot.slane %v585_v0, 2  ;;  %v564_v60 = vadd.f32 %v563_v44, %v562_v27 }
 0x58b   :  { %802 = vpush %v516_v47 }
 0x58c   :  { %v587_v40 = vadd.f32 %v586_v43, %v585_v0  ;;  %v565_v63 = vrot.slane %v564_v60, 1 }
 0x58e   :  { %v588_v41 = vrot.slane %v587_v40, 1  ;;  %v566_v34 = vadd.f32 %v565_v63, %v564_v60 }
 0x590   :  { %v589_v1 = vadd.f32 %v588_v41, %v587_v40 }
 0x5bc   :  { %s803_s0 = spop %802 }
 0x5bd   :  { %s520_s25 = smul.f32 0.00390625, %s803_s0 }
 0x5bf   :  { %s521_s26 = sadd.f32 1e-05, %s520_s25 }
 0x5c1   :  { %v522_v59 = vstv %s521_s26 }
 0x5c2   :  { %890 = vrsqrt.f32 %v522_v59 }
 0x5cf   :  { %v891_v50 = vpop.eup %890 }
 0x5d0   :  { %804 = vpush %v891_v50 }
 0x5d1   :  { %806 = vpush %v566_v34 }
 0x5d2   :  { %808 = vpush %v589_v1 }
 0x601   :  { %s805_s27 = spop %804 }
 0x602   :  { %v525_v9 = vstv %s805_s27  ;;  %s807_s28 = spop %806 }
 0x603   :  { %v526_v17 = vmul.f32 %v525_v9, %v1253_v6  ;;  %v527_v57 = vmul.f32 %v525_v9, %v1255_v3  ;;  %s570_s29 = smul.f32 0.0009765625, %s807_s28  ;;  %s809_s30 = spop %808  ;;  %v399_v6 = vmax.f32 %v397_v16, 0.0 }
 0x604   :  { %s593_s4 = smul.f32 0.0009765625, %s809_s30 }
 0x605   :  { %v528_v21 = vmul.f32 %v526_v17, %v1245_v51  ;;  %v529_v35 = vmul.f32 %v527_v57, %v1245_v51  ;;  %v571_v48 = vstv %s570_s29 }
 0x606   :  { %v572_v49 = vsel %vm537_vm4, %v571_v48, 0.0  ;;  %v594_v31 = vstv %s593_s4 }
 0x607   :  { %v530_v3 = vadd.f32 %v528_v21, %v1248_v55  ;;  %v531_v38 = vadd.f32 %v529_v35, %v1248_v55  ;;  %v595_v12 = vsel %vm539_vm5, %v594_v31, %v572_v49  ;;  %v665_v55 = vmul.f32 %v1257_v5, %v399_v6 }
 0x608   :  { %v1308_v11 = vsub.f32 %v1273_v19, %v595_v12  ;;  %v1311_v13 = vsub.f32 %v1275_v53, %v595_v12 }
 0x609   :  { %v532_v51 = vmax.f32 %v530_v3, 0.0  ;;  %v533_v20 = vmax.f32 %v531_v38, 0.0 }
 0x60a   :  { %v598_v14 = vmul.f32 %v1308_v11, %v1308_v11  ;;  %v599_v15 = vmul.f32 %v1311_v13, %v1311_v13 }
 0x60b   :  { %v666_v23 = vmul.f32 %v1265_v10, %v532_v51  ;;  %v667_v19 = vmul.f32 %v1265_v10, %v533_v20 }
 0x60c   :  { %v600_v24 = vsel %vm264_vm2, %v598_v14, 0.0  ;;  %v601_v53 = vsel %vm264_vm2, %v599_v15, 0.0  ;;  %v623_v28 = vrot.slane %v598_v14, 4  ;;  %v624_v29 = vrot.slane %v599_v15, 4 }
 0x60d   :  { %v602_v30 = vadd.f32 %v601_v53, %v600_v24  ;;  %v1325_v25 = vadd.f32 %v666_v23, %v664_v18  ;;  %v1327_v26 = vadd.f32 %v667_v19, %v665_v55 }
 0x60e   :  { %v627_v36 = vsel %vm264_vm2, %v623_v28, 0.0  ;;  %v628_v39 = vsel %vm264_vm2, %v624_v29, 0.0 }
 0x60f   :  { %603 = vadd.xlane.f32.xlu1 %v602_v30  ;;  %v629_v5 = vadd.f32 %v628_v39, %v627_v36  ;;  %v670_v10 = vsel %vm264_vm2, %v1325_v25, 0.0  ;;  %v671_v32 = vsel %vm264_vm2, %v1327_v26, 0.0  ;;  %v689_v42 = vrot.slane %v1325_v25, 4 }
 0x610   :  { %v690_v33 = vrot.slane %v1327_v26, 4  ;;  %v672_v45 = vadd.f32 %v671_v32, %v670_v10  ;;  %v900_v10 = vld [vmem:[%s1386_s1] sm:$0xff] }
 0x611   :  { %v693_v46 = vsel %vm264_vm2, %v689_v42, 0.0  ;;  %v945_v42 = vmov 21  }
 0x612   :  { %v694_v47 = vsel %vm264_vm2, %v690_v33, 0.0 }
 0x613   :  { %630 = vadd.xlane.f32.xlu1 %v629_v5  ;;  %v695_v52 = vadd.f32 %v694_v47, %v693_v46 }
 0x617   :  { %673 = vadd.xlane.f32.xlu1 %v672_v45 }
 0x61b   :  { %696 = vadd.xlane.f32.xlu1 %v695_v52 }
 0x698   :  { %v604_v58 = vpop.xlane.xlu1 %603 }
 0x699   :  { %v605_v54 = vrot.slane %v604_v58, 4 }
 0x69b   :  { %v606_v37 = vadd.f32 %v605_v54, %v604_v58 }
 0x69c   :  { %v631_v43 = vpop.xlane.xlu1 %630 }
 0x69d   :  { %v607_v27 = vrot.slane %v606_v37, 2  ;;  %v632_v60 = vrot.slane %v631_v43, 4 }
 0x69f   :  { %v608_v0 = vadd.f32 %v607_v27, %v606_v37  ;;  %v633_v40 = vadd.f32 %v632_v60, %v631_v43 }
 0x6a0   :  { %v674_v56 = vpop.xlane.xlu1 %673 }
 0x6a1   :  { %v609_v59 = vrot.slane %v608_v0, 1  ;;  %v634_v41 = vrot.slane %v633_v40, 2  ;;  %v675_v4 = vrot.slane %v674_v56, 4 }
 0x6a3   :  { %v610_v44 = vadd.f32 %v609_v59, %v608_v0  ;;  %v635_v50 = vadd.f32 %v634_v41, %v633_v40  ;;  %v676_v9 = vadd.f32 %v675_v4, %v674_v56 }
 0x6a4   :  { %v697_v2 = vpop.xlane.xlu1 %696 }
 0x6a5   :  { %810 = vpush %v610_v44  ;;  %v636_v34 = vrot.slane %v635_v50, 1  ;;  %v698_v8 = vrot.slane %v697_v2, 4  ;;  %v677_v57 = vrot.slane %v676_v9, 2 }
 0x6a7   :  { %v637_v61 = vadd.f32 %v636_v34, %v635_v50  ;;  %v699_v16 = vadd.f32 %v698_v8, %v697_v2  ;;  %v678_v35 = vadd.f32 %v677_v57, %v676_v9 }
 0x6a9   :  { %v700_v21 = vrot.slane %v699_v16, 2  ;;  %v679_v22 = vrot.slane %v678_v35, 1 }
 0x6ab   :  { %v701_v48 = vadd.f32 %v700_v21, %v699_v16  ;;  %v680_v6 = vadd.f32 %v679_v22, %v678_v35 }
 0x6ad   :  { %v702_v49 = vrot.slane %v701_v48, 1 }
 0x6af   :  { %v703_v3 = vadd.f32 %v702_v49, %v701_v48 }
 0x6d6   :  { %s811_s5 = spop %810 }
 0x6d7   :  { %s614_s6 = smul.f32 0.0009765625, %s811_s5 }
 0x6d9   :  { %s615_s7 = sadd.f32 1e-05, %s614_s6 }
 0x6db   :  { %v616_v63 = vstv %s615_s7 }
 0x6dc   :  { %892 = vrsqrt.f32 %v616_v63 }
 0x6e9   :  { %v893_v1 = vpop.eup %892 }
 0x6ea   :  { %812 = vpush %v893_v1 }
 0x6eb   :  { %814 = vpush %v637_v61 }
 0x71b   :  { %s1337_s8 = spop %812 }
 0x71c   :  { %s815_s9 = spop %814  ;;  %v619_v39 = vstv %s1337_s8 }
 0x71d   :  { %s641_s10 = smul.f32 0.0009765625, %s815_s9 }
 0x71f   :  { %s642_s11 = sadd.f32 1e-05, %s641_s10 }
 0x721   :  { %v643_v17 = vstv %s642_s11 }
 0x722   :  { %894 = vrsqrt.f32 %v643_v17 }
 0x72f   :  { %v895_v31 = vpop.eup %894 }
 0x730   :  { %816 = vpush %v895_v31 }
 0x731   :  { %818 = vpush %v680_v6 }
 0x732   :  { %820 = vpush %v703_v3 }
 0x761   :  { %s817_s12 = spop %816 }
 0x762   :  { %s819_s13 = spop %818 }
 0x763   :  { %s684_s14 = smul.f32 0.0009765625, %s819_s13  ;;  %s821_s15 = spop %820 }
 0x764   :  { %s707_s16 = smul.f32 0.0009765625, %s821_s15 }
 0x765   :  { %v685_v38 = vstv %s684_s14 }
 0x766   :  { %v686_v12 = vsel %vm537_vm4, %v685_v38, 0.0  ;;  %v708_v51 = vstv %s707_s16 }
 0x767   :  { %v709_v20 = vsel %vm539_vm5, %v708_v51, %v686_v12 }
 0x768   :  { %v1344_v14 = vsub.f32 %v1325_v25, %v709_v20  ;;  %v1347_v15 = vsub.f32 %v1327_v26, %v709_v20  ;;  %v646_v25 = vstv %s817_s12  ;;  %v620_v26 = vsel %vm537_vm4, %v619_v39, 0.0 }
 0x769   :  { %v647_v5 = vsel %vm539_vm5, %v646_v25, %v620_v26 }
 0x76a   :  { %v712_v18 = vmul.f32 %v1344_v14, %v1344_v14  ;;  %v713_v55 = vmul.f32 %v1347_v15, %v1347_v15  ;;  %v648_v32 = vmul.f32 %v900_v10, %v647_v5 }
 0x76c   :  { %v714_v23 = vsel %vm264_vm2, %v712_v18, 0.0  ;;  %v715_v19 = vsel %vm264_vm2, %v713_v55, 0.0  ;;  %v737_v24 = vrot.slane %v712_v18, 4  ;;  %v738_v53 = vrot.slane %v713_v55, 4 }
 0x76d   :  { %v716_v28 = vadd.f32 %v715_v19, %v714_v23 }
 0x76e   :  { %v741_v29 = vsel %vm264_vm2, %v737_v24, 0.0  ;;  %v742_v30 = vsel %vm264_vm2, %v738_v53, 0.0 }
 0x76f   :  { %717 = vadd.xlane.f32.xlu1 %v716_v28  ;;  %v743_v36 = vadd.f32 %v742_v30, %v741_v29 }
 0x771   :  { %744 = vadd.xlane.f32.xlu0 %v743_v36 }
 0x780   :  { %651 = vperm.xlu1 %881, %v648_v32  }
 0x784   :  { %883 = vset.pattern.permute.xlu1 %v945_v42 }
 0x785   :  { %657 = vperm.xlu1 %883, %v900_v10  }
 0x7f8   :  { %v718_v33 = vpop.xlane.xlu1 %717 }
 0x7f9   :  { %v719_v45 = vrot.slane %v718_v33, 4 }
 0x7fa   :  { %v745_v60 = vpop.xlane.xlu0 %744 }
 0x7fb   :  { %v720_v46 = vadd.f32 %v719_v45, %v718_v33  ;;  %v746_v40 = vrot.slane %v745_v60, 4 }
 0x7fc   :  { %v652_v47 = vpop.permute.xlu1 %651 }
 0x7fd   :  { %v721_v52 = vrot.slane %v720_v46, 2  ;;  %v654_v58 = vmul.f32 %v652_v47, %v1308_v11  ;;  %v655_v54 = vmul.f32 %v652_v47, %v1311_v13  ;;  %v747_v11 = vadd.f32 %v746_v40, %v745_v60 }
 0x7ff   :  { %v722_v37 = vadd.f32 %v721_v52, %v720_v46  ;;  %v748_v63 = vrot.slane %v747_v11, 2 }
 0x800   :  { %v658_v27 = vpop.permute.xlu1 %657 }
 0x801   :  { %v660_v0 = vadd.f32 %v658_v27, %v654_v58  ;;  %v661_v59 = vadd.f32 %v658_v27, %v655_v54  ;;  %v723_v44 = vrot.slane %v722_v37, 1  ;;  %v749_v41 = vadd.f32 %v748_v63, %v747_v11 }
 0x803   :  { %662 = vst [vmem:[%s1388_s3] sm:$0xff] %v660_v0  ;;  %663 = vst [vmem:[%s1388_s3 + $0x8] sm:$0xff] %v661_v59  ;;  %v724_v43 = vadd.f32 %v723_v44, %v722_v37  ;;  %v750_v50 = vrot.slane %v749_v41, 1 }
 0x805   :  { %822 = vpush %v724_v43  ;;  %v751_v1 = vadd.f32 %v750_v50, %v749_v41 }
 0x836   :  { %s823_s21 = spop %822 }
 0x837   :  { %s728_s22 = smul.f32 0.0009765625, %s823_s21 }
 0x839   :  { %s729_s23 = sadd.f32 1e-05, %s728_s22 }
 0x83b   :  { %v730_v13 = vstv %s729_s23 }
 0x83c   :  { %896 = vrsqrt.f32 %v730_v13 }
 0x849   :  { %v897_v34 = vpop.eup %896 }
 0x84a   :  { %824 = vpush %v897_v34 }
 0x84b   :  { %826 = vpush %v751_v1 }
 0x87b   :  { %s825_s24 = spop %824 }
 0x87c   :  { %s827_s0 = spop %826  ;;  %v733_v56 = vstv %s825_s24 }
 0x87d   :  { %s755_s25 = smul.f32 0.0009765625, %s827_s0  ;;  %v734_v2 = vsel %vm537_vm4, %v733_v56, 0.0 }
 0x87f   :  { %s756_s26 = sadd.f32 1e-05, %s755_s25 }
 0x881   :  { %v757_v61 = vstv %s756_s26 }
 0x882   :  { %898 = vrsqrt.f32 %v757_v61 }
 0x88f   :  { %v899_v62 = vpop.eup %898 }
 0x890   :  { %828 = vpush %v899_v62 }
 0x8c1   :  { %s829_s27 = spop %828 }
 0x8c2   :  { %v760_v4 = vstv %s829_s27 }
 0x8c3   :  { %v761_v8 = vsel %vm539_vm5, %v760_v4, %v734_v2 }
 0x8c4   :  { %v762_v9 = vmul.f32 %v900_v10, %v761_v8 }
 0x8c6   :  { %765 = vperm.xlu0 %882, %v762_v9  }
 0x941   :  { %v766_v16 = vpop.permute.xlu0 %765 }
 0x942   :  { %v768_v17 = vmul.f32 %v766_v16, %v1344_v14  ;;  %v769_v57 = vmul.f32 %v766_v16, %v1347_v15 }
 0x944   :  { %v770_v21 = vadd.f32 %v768_v17, %v658_v27  ;;  %v771_v35 = vadd.f32 %v769_v57, %v658_v27 }
 0x946   :  { %772 = vst [vmem:[%s1388_s3 + $0x10] sm:$0xff] %v770_v21  ;;  %773 = vst [vmem:[%s1388_s3 + $0x18] sm:$0xff] %v771_v35 }
 0x947   :  { %778 = vsyncpa [#allocation3], 1 }

</bundles_post_ra>
